<compile_context>
chip_gen: v6e
topology: v6e:2x2x1
jax: 0.10.0
libtpu: 0.0.40
codegen_flags: <defaults>
</compile_context>

<pallas_src>
import functools

import jax
import jax.numpy as jnp
from jax import lax
from jax.experimental import pallas as pl
from jax.experimental.pallas import tpu as pltpu


# ----------------------------------------------------------------------------
# The single fused kernel
# ----------------------------------------------------------------------------
def _dqn_fused_kernel(x_ref, w1_ref, b1_ref, w2_ref, b2_ref, w3_ref, b3_ref,
                      wl1_ref, bl1_ref, wl2_ref, bl2_ref, o_ref):
    f32, bf16 = jnp.float32, jnp.bfloat16
    N, Hs, Ws, Cs = x_ref.shape          # space-to-depth(4) input, e.g. (2,9,9,64)
    H1, W1 = Hs - 1, Ws - 1              # conv1 output spatial (8, 8)
    C1 = w1_ref.shape[1]                 # 32
    C2 = w2_ref.shape[1]                 # 64
    C3 = w3_ref.shape[1]                 # 64

    # conv1 (+bn1): the 8x8/stride-4 conv == 2x2/stride-1 conv on the s2d input.
    x = x_ref[...]                                           # f32 in VMEM
    acc1 = jnp.zeros((N * H1 * W1, C1), f32)
    for t, (bi, bj) in enumerate(((0, 0), (0, 1), (1, 0), (1, 1))):
        lhs = x[:, bi:bi + H1, bj:bj + W1, :].reshape(N * H1 * W1, Cs)
        acc1 += jnp.dot(lhs.astype(bf16), w1_ref[t * Cs:(t + 1) * Cs, :],
                        preferred_element_type=f32)
    acc1 += b1_ref[...]                                      # (1, C1) broadcast
    act1 = acc1.reshape(N, H1, W1, C1)

    # conv2 (+bn2), evaluated at stride 1 so every tap is a contiguous slice;
    # the stride-2 subsampling happens when conv3 reads the result.
    H2, W2 = H1 - 3, W1 - 3                                  # stride-1 extent (5, 5)
    lhs_rows = [act1[:, i:i + H2, :, :].reshape(N * H2 * W1, C1).astype(bf16)
                for i in range(4)]                           # H-taps, reused over W-taps
    out2 = jnp.zeros((N, H2, W2, C2), f32)
    for j in range(4):
        t_j = jnp.zeros((N * H2 * W1, C2), f32)
        for i in range(4):
            t = i * 4 + j
            t_j += jnp.dot(lhs_rows[i], w2_ref[t * C1:(t + 1) * C1, :],
                           preferred_element_type=f32)
        out2 += t_j.reshape(N, H2, W1, C2)[:, :, j:j + W2, :]
    out2 += b2_ref[...]                                      # (1, C2) broadcast

    # conv3 (+bn3): 3x3/stride-1 on the stride-2 subsampled conv2 output; the
    # module's conv3 output is 1x1 here so its rows are already the l1 input.
    acc3 = jnp.zeros((N, C3), f32)
    for p in range(3):
        for q in range(3):
            t = p * 3 + q
            acc3 += jnp.dot(out2[:, 2 * p, 2 * q, :].astype(bf16),
                            w3_ref[t * C2:(t + 1) * C2, :],
                            preferred_element_type=f32)
    acc3 += b3_ref[...]

    # l1 + ReLU (the only ReLU in the reference forward), then l2 head.
    h1 = jnp.dot(acc3.astype(bf16), wl1_ref[...],
                 preferred_element_type=f32) + bl1_ref[...]
    h1 = jnp.maximum(h1, 0.0)
    out = jnp.dot(h1.astype(bf16), wl2_ref[...],
                  preferred_element_type=f32) + bl2_ref[...]
    o_ref[...] = out.astype(o_ref.dtype)


def _full_spec(shape):
    # gridless call: every operand is a single full-array VMEM block
    return pl.BlockSpec(shape, lambda: (0,) * len(shape))


# ----------------------------------------------------------------------------
# One-time parameter prep: fold BN, reorder taps, pad only the head, bf16.
# ----------------------------------------------------------------------------
def _bn_scale_bias(b, gamma, beta, mean, var, eps):
    scale = gamma / jnp.sqrt(var + eps)
    return scale, beta + scale * (b - mean)


def prepare_params(p, eps=1e-5):
    q = {}

    # conv1 + bn1, reordered for the space-to-depth(4) input and split into
    # the four 2x2 taps of the equivalent stride-1 conv.
    s1, bias1 = _bn_scale_bias(p["conv1_b"], p["bn1_g"], p["bn1_b"],
                               p["bn1_m"], p["bn1_v"], eps)
    w = jnp.transpose(p["conv1_w"], (2, 3, 1, 0)) * s1[None, None, None, :]  # (8,8,4,32)
    kh, kw, cin, cout = w.shape
    w = w.reshape(2, kh // 2, 2, kw // 2, cin, cout)          # (bi,dh,bj,dw,cin,cout)
    w = jnp.transpose(w, (0, 2, 1, 3, 4, 5))                  # (bi,bj,dh,dw,cin,cout)
    q["w1"] = w.reshape(4 * (kh // 2) * (kw // 2) * cin, cout).astype(jnp.bfloat16)
    q["b1"] = bias1.reshape(1, -1).astype(jnp.float32)

    # conv2 / conv3: tap-major (kh,kw,cin,cout) weights, BN folded, K unpadded.
    s2, bias2 = _bn_scale_bias(p["conv2_b"], p["bn2_g"], p["bn2_b"],
                               p["bn2_m"], p["bn2_v"], eps)
    w = jnp.transpose(p["conv2_w"], (2, 3, 1, 0)) * s2[None, None, None, :]  # (4,4,32,64)
    q["w2"] = w.reshape(-1, w.shape[-1]).astype(jnp.bfloat16)
    q["b2"] = bias2.reshape(1, -1).astype(jnp.float32)

    s3, bias3 = _bn_scale_bias(p["conv3_b"], p["bn3_g"], p["bn3_b"],
                               p["bn3_m"], p["bn3_v"], eps)
    w = jnp.transpose(p["conv3_w"], (2, 3, 1, 0)) * s3[None, None, None, :]  # (3,3,64,64)
    q["w3"] = w.reshape(-1, w.shape[-1]).astype(jnp.bfloat16)
    q["b3"] = bias3.reshape(1, -1).astype(jnp.float32)

    # l1: K = 64 real rows only (1x1 conv3 output -> flatten == channels).
    lin_in = p["l1_w"].shape[0]
    assert lin_in == p["conv3_w"].shape[0], "fused kernel assumes 1x1 conv3 output"
    q["wl1"] = p["l1_w"].astype(jnp.bfloat16)
    q["bl1"] = p["l1_b"].reshape(1, -1).astype(jnp.float32)

    # l2: pad the head to a full 128-lane tile for a lane-dense store;
    # the wrapper slices the real outputs back (pad region is exact zeros).
    outs = p["l2_w"].shape[1]
    no_pad = ((outs + 127) // 128) * 128
    q["wl2"] = jnp.pad(p["l2_w"], ((0, 0), (0, no_pad - outs))).astype(jnp.bfloat16)
    q["bl2"] = jnp.pad(p["l2_b"], (0, no_pad - outs)).reshape(1, -1).astype(jnp.float32)
    return q


# ----------------------------------------------------------------------------
# Forward pass: one pallas_call, a handful of XLA ops on the 41 KB input.
# ----------------------------------------------------------------------------
def conv2d_size_out(size, kernel_size, stride):
    return (size - (kernel_size - 1) - 1) // stride + 1


@functools.partial(jax.jit, static_argnames=("outputs",))
def dqn_forward(q, x, *, outputs):
    n, c, h, w = x.shape
    c1h, c1w = conv2d_size_out(h, 8, 4), conv2d_size_out(w, 8, 4)
    c2h, c2w = conv2d_size_out(c1h, 4, 2), conv2d_size_out(c1w, 4, 2)
    c3h, c3w = conv2d_size_out(c2h, 3, 1), conv2d_size_out(c2w, 3, 1)
    assert c3h == 1 and c3w == 1, "fused kernel assumes a 1x1 conv3 output"
    assert h % 4 == 0 and w % 4 == 0
    # TODO(synk): general conv3 spatial (e.g. 84x84 inputs -> 7x7) needs the
    # NCHW-flatten (ho,wo,c) row permutation before l1 and row-stacked tail
    # matmuls; also add an M-tiled grid + dimension_semantics=("parallel",)
    # and explicit vmem_limit budgeting when scaling to production batch.

    # NCHW -> NHWC -> space-to-depth(4) (stride == block, pure reshape), f32.
    xs = jnp.transpose(x, (0, 2, 3, 1))
    xs = xs.reshape(n, h // 4, 4, w // 4, 4, c)
    xs = jnp.transpose(xs, (0, 1, 3, 2, 4, 5)).reshape(n, h // 4, w // 4, 16 * c)

    no_pad = q["wl2"].shape[1]
    args = (xs, q["w1"], q["b1"], q["w2"], q["b2"], q["w3"], q["b3"],
            q["wl1"], q["bl1"], q["wl2"], q["bl2"])
    out = pl.pallas_call(
        _dqn_fused_kernel,
        out_shape=jax.ShapeDtypeStruct((n, no_pad), jnp.float32),
        in_specs=[_full_spec(a.shape) for a in args],
        out_specs=_full_spec((n, no_pad)),
        compiler_params=pltpu.CompilerParams(
            vmem_limit_bytes=32 * 1024 * 1024),
    )(*args)
    return out[:, :outputs]


# ----------------------------------------------------------------------------
# Synthetic deterministic parameters (PyTorch-shaped) and f32 JAX reference
# ----------------------------------------------------------------------------
def init_params(key, h, w, outputs):
    convw = conv2d_size_out(conv2d_size_out(conv2d_size_out(w, 8, 4), 4, 2), 3, 1)
    convh = conv2d_size_out(conv2d_size_out(conv2d_size_out(h, 8, 4), 4, 2), 3, 1)
    lin_in = convw * convh * 64
    ks = iter(jax.random.split(key, 32))

    def u(shape, s=0.05):
        return jax.random.uniform(next(ks), shape, jnp.float32, -s, s)

    p = {}
    p["conv1_w"] = u((32, 4, 8, 8)); p["conv1_b"] = u((32,))
    p["bn1_g"] = 1.0 + u((32,)); p["bn1_b"] = u((32,))
    p["bn1_m"] = u((32,)); p["bn1_v"] = 1.0 + u((32,))
    p["conv2_w"] = u((64, 32, 4, 4)); p["conv2_b"] = u((64,))
    p["bn2_g"] = 1.0 + u((64,)); p["bn2_b"] = u((64,))
    p["bn2_m"] = u((64,)); p["bn2_v"] = 1.0 + u((64,))
    p["conv3_w"] = u((64, 64, 3, 3)); p["conv3_b"] = u((64,))
    p["bn3_g"] = 1.0 + u((64,)); p["bn3_b"] = u((64,))
    p["bn3_m"] = u((64,)); p["bn3_v"] = 1.0 + u((64,))
    p["l1_w"] = u((lin_in, 512)); p["l1_b"] = u((512,))
    p["l2_w"] = u((512, outputs)); p["l2_b"] = u((outputs,))
    return p


def dqn_ref(params, x, eps=1e-5):
    p = params

    def conv(x, w, b, stride):
        y = lax.conv_general_dilated(
            x, w, window_strides=(stride, stride), padding="VALID",
            dimension_numbers=("NCHW", "OIHW", "NCHW"))
        return y + b[None, :, None, None]

    def bn(x, g, be, m, v):
        return (g[None, :, None, None] * (x - m[None, :, None, None])
                / jnp.sqrt(v[None, :, None, None] + eps) + be[None, :, None, None])

    x = bn(conv(x, p["conv1_w"], p["conv1_b"], 4),
           p["bn1_g"], p["bn1_b"], p["bn1_m"], p["bn1_v"])
    x = bn(conv(x, p["conv2_w"], p["conv2_b"], 2),
           p["bn2_g"], p["bn2_b"], p["bn2_m"], p["bn2_v"])
    x = bn(conv(x, p["conv3_w"], p["conv3_b"], 1),
           p["bn3_g"], p["bn3_b"], p["bn3_m"], p["bn3_v"])
    flat = x.reshape(x.shape[0], -1)
    h1 = jnp.maximum(flat @ p["l1_w"] + p["l1_b"], 0.0)
    return h1 @ p["l2_w"] + p["l2_b"]


if __name__ == "__main__":
    # 8/4 -> 4/2 -> 3/1 conv stack: 36x36 is the smallest input giving a valid
    # (1x1x64) conv3 feature map, so that is the "small shape" used here.
    batch, in_ch, H, W, outputs = 2, 4, 36, 36, 6

    key = jax.random.PRNGKey(0)
    kx, kp = jax.random.split(key)
    x = jax.random.normal(kx, (batch, in_ch, H, W), jnp.float32)
    params = init_params(kp, H, W, outputs)
    prepped = prepare_params(params)             # one-time weight prep

    out = dqn_forward(prepped, x, outputs=outputs)
    out = jax.block_until_ready(out)

    ref = dqn_ref(params, x)
    assert out.shape == (batch, outputs), out.shape
    # bf16 matmul operands with f32 accumulation -> loosened tolerance.
    assert jnp.allclose(out, ref, atol=2e-2, rtol=2e-2), \
        float(jnp.max(jnp.abs(out - ref)))

    print("KERNEL_OK")
</pallas_src>

<mosaic_0001>
module attributes {stable_mosaic.version = 11 : i64} {
  func.func @_dqn_fused_kernel(%arg0: memref<2x9x9x64xf32, #tpu.memory_space<vmem>>, %arg1: memref<256x32xbf16, #tpu.memory_space<vmem>>, %arg2: memref<1x32xf32, #tpu.memory_space<vmem>>, %arg3: memref<512x64xbf16, #tpu.memory_space<vmem>>, %arg4: memref<1x64xf32, #tpu.memory_space<vmem>>, %arg5: memref<576x64xbf16, #tpu.memory_space<vmem>>, %arg6: memref<1x64xf32, #tpu.memory_space<vmem>>, %arg7: memref<64x512xbf16, #tpu.memory_space<vmem>>, %arg8: memref<1x512xf32, #tpu.memory_space<vmem>>, %arg9: memref<512x128xbf16, #tpu.memory_space<vmem>>, %arg10: memref<1x128xf32, #tpu.memory_space<vmem>>, %arg11: memref<2x128xf32, #tpu.memory_space<vmem>>) attributes {dimension_semantics = [], scalar_prefetch = 0 : i64, scratch_operands = 0 : i64, tpu.core_type = #tpu.core_type<tc>} {
    %c0 = arith.constant 0 : index
    %c0_0 = arith.constant 0 : index
    %c0_1 = arith.constant 0 : index
    %c0_2 = arith.constant 0 : index
    %0 = vector.load %arg0[%c0, %c0_0, %c0_1, %c0_2] : memref<2x9x9x64xf32, #tpu.memory_space<vmem>>, vector<2x9x9x64xf32>
    %cst = arith.constant 0.000000e+00 : f32
    %1 = vector.broadcast %cst : f32 to vector<128x32xf32>
    %2 = vector.extract_strided_slice %0 {offsets = [0, 0, 0, 0], sizes = [2, 8, 8, 64], strides = [1, 1, 1, 1]} : vector<2x9x9x64xf32> to vector<2x8x8x64xf32>
    %3 = vector.shape_cast %2 : vector<2x8x8x64xf32> to vector<128x64xf32>
    %4 = arith.truncf %3 : vector<128x64xf32> to vector<128x64xbf16>
    %c0_3 = arith.constant 0 : index
    %c0_4 = arith.constant 0 : index
    %5 = vector.load %arg1[%c0_3, %c0_4] : memref<256x32xbf16, #tpu.memory_space<vmem>>, vector<64x32xbf16>
    %cst_5 = arith.constant dense<0.000000e+00> : vector<128x32xf32>
    %6 = tpu.matmul %4, %5, %cst_5 {dimension_numbers = #tpu.dot_dimension_numbers<[1], [0], [0], [1], [0, 0, 1, 1], [], []>} : vector<128x64xbf16>, vector<64x32xbf16>, vector<128x32xf32> -> vector<128x32xf32>
    %7 = arith.addf %1, %6 : vector<128x32xf32>
    %8 = vector.extract_strided_slice %0 {offsets = [0, 0, 1, 0], sizes = [2, 8, 8, 64], strides = [1, 1, 1, 1]} : vector<2x9x9x64xf32> to vector<2x8x8x64xf32>
    %9 = vector.shape_cast %8 : vector<2x8x8x64xf32> to vector<128x64xf32>
    %10 = arith.truncf %9 : vector<128x64xf32> to vector<128x64xbf16>
    %c64 = arith.constant 64 : index
    %c0_6 = arith.constant 0 : index
    %11 = vector.load %arg1[%c64, %c0_6] : memref<256x32xbf16, #tpu.memory_space<vmem>>, vector<64x32xbf16>
    %cst_7 = arith.constant dense<0.000000e+00> : vector<128x32xf32>
    %12 = tpu.matmul %10, %11, %cst_7 {dimension_numbers = #tpu.dot_dimension_numbers<[1], [0], [0], [1], [0, 0, 1, 1], [], []>} : vector<128x64xbf16>, vector<64x32xbf16>, vector<128x32xf32> -> vector<128x32xf32>
    %13 = arith.addf %7, %12 : vector<128x32xf32>
    %14 = vector.extract_strided_slice %0 {offsets = [0, 1, 0, 0], sizes = [2, 8, 8, 64], strides = [1, 1, 1, 1]} : vector<2x9x9x64xf32> to vector<2x8x8x64xf32>
    %15 = vector.shape_cast %14 : vector<2x8x8x64xf32> to vector<128x64xf32>
    %16 = arith.truncf %15 : vector<128x64xf32> to vector<128x64xbf16>
    %c128 = arith.constant 128 : index
    %c0_8 = arith.constant 0 : index
    %17 = vector.load %arg1[%c128, %c0_8] : memref<256x32xbf16, #tpu.memory_space<vmem>>, vector<64x32xbf16>
    %cst_9 = arith.constant dense<0.000000e+00> : vector<128x32xf32>
    %18 = tpu.matmul %16, %17, %cst_9 {dimension_numbers = #tpu.dot_dimension_numbers<[1], [0], [0], [1], [0, 0, 1, 1], [], []>} : vector<128x64xbf16>, vector<64x32xbf16>, vector<128x32xf32> -> vector<128x32xf32>
    %19 = arith.addf %13, %18 : vector<128x32xf32>
    %20 = vector.extract_strided_slice %0 {offsets = [0, 1, 1, 0], sizes = [2, 8, 8, 64], strides = [1, 1, 1, 1]} : vector<2x9x9x64xf32> to vector<2x8x8x64xf32>
    %21 = vector.shape_cast %20 : vector<2x8x8x64xf32> to vector<128x64xf32>
    %22 = arith.truncf %21 : vector<128x64xf32> to vector<128x64xbf16>
    %c192 = arith.constant 192 : index
    %c0_10 = arith.constant 0 : index
    %23 = vector.load %arg1[%c192, %c0_10] : memref<256x32xbf16, #tpu.memory_space<vmem>>, vector<64x32xbf16>
    %cst_11 = arith.constant dense<0.000000e+00> : vector<128x32xf32>
    %24 = tpu.matmul %22, %23, %cst_11 {dimension_numbers = #tpu.dot_dimension_numbers<[1], [0], [0], [1], [0, 0, 1, 1], [], []>} : vector<128x64xbf16>, vector<64x32xbf16>, vector<128x32xf32> -> vector<128x32xf32>
    %25 = arith.addf %19, %24 : vector<128x32xf32>
    %c0_12 = arith.constant 0 : index
    %c0_13 = arith.constant 0 : index
    %26 = vector.load %arg2[%c0_12, %c0_13] : memref<1x32xf32, #tpu.memory_space<vmem>>, vector<1x32xf32>
    %27 = vector.broadcast %26 : vector<1x32xf32> to vector<128x32xf32>
    %28 = arith.addf %25, %27 : vector<128x32xf32>
    %29 = vector.shape_cast %28 : vector<128x32xf32> to vector<2x8x8x32xf32>
    %30 = vector.extract_strided_slice %29 {offsets = [0, 0, 0, 0], sizes = [2, 5, 8, 32], strides = [1, 1, 1, 1]} : vector<2x8x8x32xf32> to vector<2x5x8x32xf32>
    %31 = vector.shape_cast %30 : vector<2x5x8x32xf32> to vector<80x32xf32>
    %32 = arith.truncf %31 : vector<80x32xf32> to vector<80x32xbf16>
    %33 = vector.extract_strided_slice %29 {offsets = [0, 1, 0, 0], sizes = [2, 5, 8, 32], strides = [1, 1, 1, 1]} : vector<2x8x8x32xf32> to vector<2x5x8x32xf32>
    %34 = vector.shape_cast %33 : vector<2x5x8x32xf32> to vector<80x32xf32>
    %35 = arith.truncf %34 : vector<80x32xf32> to vector<80x32xbf16>
    %36 = vector.extract_strided_slice %29 {offsets = [0, 2, 0, 0], sizes = [2, 5, 8, 32], strides = [1, 1, 1, 1]} : vector<2x8x8x32xf32> to vector<2x5x8x32xf32>
    %37 = vector.shape_cast %36 : vector<2x5x8x32xf32> to vector<80x32xf32>
    %38 = arith.truncf %37 : vector<80x32xf32> to vector<80x32xbf16>
    %39 = vector.extract_strided_slice %29 {offsets = [0, 3, 0, 0], sizes = [2, 5, 8, 32], strides = [1, 1, 1, 1]} : vector<2x8x8x32xf32> to vector<2x5x8x32xf32>
    %40 = vector.shape_cast %39 : vector<2x5x8x32xf32> to vector<80x32xf32>
    %41 = arith.truncf %40 : vector<80x32xf32> to vector<80x32xbf16>
    %cst_14 = arith.constant 0.000000e+00 : f32
    %42 = vector.broadcast %cst_14 : f32 to vector<2x5x5x64xf32>
    %cst_15 = arith.constant 0.000000e+00 : f32
    %43 = vector.broadcast %cst_15 : f32 to vector<80x64xf32>
    %c0_16 = arith.constant 0 : index
    %c0_17 = arith.constant 0 : index
    %44 = vector.load %arg3[%c0_16, %c0_17] : memref<512x64xbf16, #tpu.memory_space<vmem>>, vector<32x64xbf16>
    %cst_18 = arith.constant dense<0.000000e+00> : vector<80x64xf32>
    %45 = tpu.matmul %32, %44, %cst_18 {dimension_numbers = #tpu.dot_dimension_numbers<[1], [0], [0], [1], [0, 0, 1, 1], [], []>} : vector<80x32xbf16>, vector<32x64xbf16>, vector<80x64xf32> -> vector<80x64xf32>
    %46 = arith.addf %43, %45 : vector<80x64xf32>
    %c128_19 = arith.constant 128 : index
    %c0_20 = arith.constant 0 : index
    %47 = vector.load %arg3[%c128_19, %c0_20] : memref<512x64xbf16, #tpu.memory_space<vmem>>, vector<32x64xbf16>
    %cst_21 = arith.constant dense<0.000000e+00> : vector<80x64xf32>
    %48 = tpu.matmul %35, %47, %cst_21 {dimension_numbers = #tpu.dot_dimension_numbers<[1], [0], [0], [1], [0, 0, 1, 1], [], []>} : vector<80x32xbf16>, vector<32x64xbf16>, vector<80x64xf32> -> vector<80x64xf32>
    %49 = arith.addf %46, %48 : vector<80x64xf32>
    %c256 = arith.constant 256 : index
    %c0_22 = arith.constant 0 : index
    %50 = vector.load %arg3[%c256, %c0_22] : memref<512x64xbf16, #tpu.memory_space<vmem>>, vector<32x64xbf16>
    %cst_23 = arith.constant dense<0.000000e+00> : vector<80x64xf32>
    %51 = tpu.matmul %38, %50, %cst_23 {dimension_numbers = #tpu.dot_dimension_numbers<[1], [0], [0], [1], [0, 0, 1, 1], [], []>} : vector<80x32xbf16>, vector<32x64xbf16>, vector<80x64xf32> -> vector<80x64xf32>
    %52 = arith.addf %49, %51 : vector<80x64xf32>
    %c384 = arith.constant 384 : index
    %c0_24 = arith.constant 0 : index
    %53 = vector.load %arg3[%c384, %c0_24] : memref<512x64xbf16, #tpu.memory_space<vmem>>, vector<32x64xbf16>
    %cst_25 = arith.constant dense<0.000000e+00> : vector<80x64xf32>
    %54 = tpu.matmul %41, %53, %cst_25 {dimension_numbers = #tpu.dot_dimension_numbers<[1], [0], [0], [1], [0, 0, 1, 1], [], []>} : vector<80x32xbf16>, vector<32x64xbf16>, vector<80x64xf32> -> vector<80x64xf32>
    %55 = arith.addf %52, %54 : vector<80x64xf32>
    %56 = vector.shape_cast %55 : vector<80x64xf32> to vector<2x5x8x64xf32>
    %57 = vector.extract_strided_slice %56 {offsets = [0, 0, 0, 0], sizes = [2, 5, 5, 64], strides = [1, 1, 1, 1]} : vector<2x5x8x64xf32> to vector<2x5x5x64xf32>
    %58 = arith.addf %42, %57 : vector<2x5x5x64xf32>
    %cst_26 = arith.constant 0.000000e+00 : f32
    %59 = vector.broadcast %cst_26 : f32 to vector<80x64xf32>
    %c32 = arith.constant 32 : index
    %c0_27 = arith.constant 0 : index
    %60 = vector.load %arg3[%c32, %c0_27] : memref<512x64xbf16, #tpu.memory_space<vmem>>, vector<32x64xbf16>
    %cst_28 = arith.constant dense<0.000000e+00> : vector<80x64xf32>
    %61 = tpu.matmul %32, %60, %cst_28 {dimension_numbers = #tpu.dot_dimension_numbers<[1], [0], [0], [1], [0, 0, 1, 1], [], []>} : vector<80x32xbf16>, vector<32x64xbf16>, vector<80x64xf32> -> vector<80x64xf32>
    %62 = arith.addf %59, %61 : vector<80x64xf32>
    %c160 = arith.constant 160 : index
    %c0_29 = arith.constant 0 : index
    %63 = vector.load %arg3[%c160, %c0_29] : memref<512x64xbf16, #tpu.memory_space<vmem>>, vector<32x64xbf16>
    %cst_30 = arith.constant dense<0.000000e+00> : vector<80x64xf32>
    %64 = tpu.matmul %35, %63, %cst_30 {dimension_numbers = #tpu.dot_dimension_numbers<[1], [0], [0], [1], [0, 0, 1, 1], [], []>} : vector<80x32xbf16>, vector<32x64xbf16>, vector<80x64xf32> -> vector<80x64xf32>
    %65 = arith.addf %62, %64 : vector<80x64xf32>
    %c288 = arith.constant 288 : index
    %c0_31 = arith.constant 0 : index
    %66 = vector.load %arg3[%c288, %c0_31] : memref<512x64xbf16, #tpu.memory_space<vmem>>, vector<32x64xbf16>
    %cst_32 = arith.constant dense<0.000000e+00> : vector<80x64xf32>
    %67 = tpu.matmul %38, %66, %cst_32 {dimension_numbers = #tpu.dot_dimension_numbers<[1], [0], [0], [1], [0, 0, 1, 1], [], []>} : vector<80x32xbf16>, vector<32x64xbf16>, vector<80x64xf32> -> vector<80x64xf32>
    %68 = arith.addf %65, %67 : vector<80x64xf32>
    %c416 = arith.constant 416 : index
    %c0_33 = arith.constant 0 : index
    %69 = vector.load %arg3[%c416, %c0_33] : memref<512x64xbf16, #tpu.memory_space<vmem>>, vector<32x64xbf16>
    %cst_34 = arith.constant dense<0.000000e+00> : vector<80x64xf32>
    %70 = tpu.matmul %41, %69, %cst_34 {dimension_numbers = #tpu.dot_dimension_numbers<[1], [0], [0], [1], [0, 0, 1, 1], [], []>} : vector<80x32xbf16>, vector<32x64xbf16>, vector<80x64xf32> -> vector<80x64xf32>
    %71 = arith.addf %68, %70 : vector<80x64xf32>
    %72 = vector.shape_cast %71 : vector<80x64xf32> to vector<2x5x8x64xf32>
    %73 = vector.extract_strided_slice %72 {offsets = [0, 0, 1, 0], sizes = [2, 5, 5, 64], strides = [1, 1, 1, 1]} : vector<2x5x8x64xf32> to vector<2x5x5x64xf32>
    %74 = arith.addf %58, %73 : vector<2x5x5x64xf32>
    %cst_35 = arith.constant 0.000000e+00 : f32
    %75 = vector.broadcast %cst_35 : f32 to vector<80x64xf32>
    %c64_36 = arith.constant 64 : index
    %c0_37 = arith.constant 0 : index
    %76 = vector.load %arg3[%c64_36, %c0_37] : memref<512x64xbf16, #tpu.memory_space<vmem>>, vector<32x64xbf16>
    %cst_38 = arith.constant dense<0.000000e+00> : vector<80x64xf32>
    %77 = tpu.matmul %32, %76, %cst_38 {dimension_numbers = #tpu.dot_dimension_numbers<[1], [0], [0], [1], [0, 0, 1, 1], [], []>} : vector<80x32xbf16>, vector<32x64xbf16>, vector<80x64xf32> -> vector<80x64xf32>
    %78 = arith.addf %75, %77 : vector<80x64xf32>
    %c192_39 = arith.constant 192 : index
    %c0_40 = arith.constant 0 : index
    %79 = vector.load %arg3[%c192_39, %c0_40] : memref<512x64xbf16, #tpu.memory_space<vmem>>, vector<32x64xbf16>
    %cst_41 = arith.constant dense<0.000000e+00> : vector<80x64xf32>
    %80 = tpu.matmul %35, %79, %cst_41 {dimension_numbers = #tpu.dot_dimension_numbers<[1], [0], [0], [1], [0, 0, 1, 1], [], []>} : vector<80x32xbf16>, vector<32x64xbf16>, vector<80x64xf32> -> vector<80x64xf32>
    %81 = arith.addf %78, %80 : vector<80x64xf32>
    %c320 = arith.constant 320 : index
    %c0_42 = arith.constant 0 : index
    %82 = vector.load %arg3[%c320, %c0_42] : memref<512x64xbf16, #tpu.memory_space<vmem>>, vector<32x64xbf16>
    %cst_43 = arith.constant dense<0.000000e+00> : vector<80x64xf32>
    %83 = tpu.matmul %38, %82, %cst_43 {dimension_numbers = #tpu.dot_dimension_numbers<[1], [0], [0], [1], [0, 0, 1, 1], [], []>} : vector<80x32xbf16>, vector<32x64xbf16>, vector<80x64xf32> -> vector<80x64xf32>
    %84 = arith.addf %81, %83 : vector<80x64xf32>
    %c448 = arith.constant 448 : index
    %c0_44 = arith.constant 0 : index
    %85 = vector.load %arg3[%c448, %c0_44] : memref<512x64xbf16, #tpu.memory_space<vmem>>, vector<32x64xbf16>
    %cst_45 = arith.constant dense<0.000000e+00> : vector<80x64xf32>
    %86 = tpu.matmul %41, %85, %cst_45 {dimension_numbers = #tpu.dot_dimension_numbers<[1], [0], [0], [1], [0, 0, 1, 1], [], []>} : vector<80x32xbf16>, vector<32x64xbf16>, vector<80x64xf32> -> vector<80x64xf32>
    %87 = arith.addf %84, %86 : vector<80x64xf32>
    %88 = vector.shape_cast %87 : vector<80x64xf32> to vector<2x5x8x64xf32>
    %89 = vector.extract_strided_slice %88 {offsets = [0, 0, 2, 0], sizes = [2, 5, 5, 64], strides = [1, 1, 1, 1]} : vector<2x5x8x64xf32> to vector<2x5x5x64xf32>
    %90 = arith.addf %74, %89 : vector<2x5x5x64xf32>
    %cst_46 = arith.constant 0.000000e+00 : f32
    %91 = vector.broadcast %cst_46 : f32 to vector<80x64xf32>
    %c96 = arith.constant 96 : index
    %c0_47 = arith.constant 0 : index
    %92 = vector.load %arg3[%c96, %c0_47] : memref<512x64xbf16, #tpu.memory_space<vmem>>, vector<32x64xbf16>
    %cst_48 = arith.constant dense<0.000000e+00> : vector<80x64xf32>
    %93 = tpu.matmul %32, %92, %cst_48 {dimension_numbers = #tpu.dot_dimension_numbers<[1], [0], [0], [1], [0, 0, 1, 1], [], []>} : vector<80x32xbf16>, vector<32x64xbf16>, vector<80x64xf32> -> vector<80x64xf32>
    %94 = arith.addf %91, %93 : vector<80x64xf32>
    %c224 = arith.constant 224 : index
    %c0_49 = arith.constant 0 : index
    %95 = vector.load %arg3[%c224, %c0_49] : memref<512x64xbf16, #tpu.memory_space<vmem>>, vector<32x64xbf16>
    %cst_50 = arith.constant dense<0.000000e+00> : vector<80x64xf32>
    %96 = tpu.matmul %35, %95, %cst_50 {dimension_numbers = #tpu.dot_dimension_numbers<[1], [0], [0], [1], [0, 0, 1, 1], [], []>} : vector<80x32xbf16>, vector<32x64xbf16>, vector<80x64xf32> -> vector<80x64xf32>
    %97 = arith.addf %94, %96 : vector<80x64xf32>
    %c352 = arith.constant 352 : index
    %c0_51 = arith.constant 0 : index
    %98 = vector.load %arg3[%c352, %c0_51] : memref<512x64xbf16, #tpu.memory_space<vmem>>, vector<32x64xbf16>
    %cst_52 = arith.constant dense<0.000000e+00> : vector<80x64xf32>
    %99 = tpu.matmul %38, %98, %cst_52 {dimension_numbers = #tpu.dot_dimension_numbers<[1], [0], [0], [1], [0, 0, 1, 1], [], []>} : vector<80x32xbf16>, vector<32x64xbf16>, vector<80x64xf32> -> vector<80x64xf32>
    %100 = arith.addf %97, %99 : vector<80x64xf32>
    %c480 = arith.constant 480 : index
    %c0_53 = arith.constant 0 : index
    %101 = vector.load %arg3[%c480, %c0_53] : memref<512x64xbf16, #tpu.memory_space<vmem>>, vector<32x64xbf16>
    %cst_54 = arith.constant dense<0.000000e+00> : vector<80x64xf32>
    %102 = tpu.matmul %41, %101, %cst_54 {dimension_numbers = #tpu.dot_dimension_numbers<[1], [0], [0], [1], [0, 0, 1, 1], [], []>} : vector<80x32xbf16>, vector<32x64xbf16>, vector<80x64xf32> -> vector<80x64xf32>
    %103 = arith.addf %100, %102 : vector<80x64xf32>
    %104 = vector.shape_cast %103 : vector<80x64xf32> to vector<2x5x8x64xf32>
    %105 = vector.extract_strided_slice %104 {offsets = [0, 0, 3, 0], sizes = [2, 5, 5, 64], strides = [1, 1, 1, 1]} : vector<2x5x8x64xf32> to vector<2x5x5x64xf32>
    %106 = arith.addf %90, %105 : vector<2x5x5x64xf32>
    %c0_55 = arith.constant 0 : index
    %c0_56 = arith.constant 0 : index
    %107 = vector.load %arg4[%c0_55, %c0_56] : memref<1x64xf32, #tpu.memory_space<vmem>>, vector<1x64xf32>
    %108 = vector.shape_cast %107 : vector<1x64xf32> to vector<1x1x1x64xf32>
    %109 = vector.broadcast %108 : vector<1x1x1x64xf32> to vector<2x5x5x64xf32>
    %110 = arith.addf %106, %109 : vector<2x5x5x64xf32>
    %cst_57 = arith.constant 0.000000e+00 : f32
    %111 = vector.broadcast %cst_57 : f32 to vector<2x64xf32>
    %112 = vector.extract_strided_slice %110 {offsets = [0, 0, 0, 0], sizes = [2, 1, 1, 64], strides = [1, 1, 1, 1]} : vector<2x5x5x64xf32> to vector<2x1x1x64xf32>
    %113 = vector.shape_cast %112 : vector<2x1x1x64xf32> to vector<2x64xf32>
    %114 = arith.truncf %113 : vector<2x64xf32> to vector<2x64xbf16>
    %c0_58 = arith.constant 0 : index
    %c0_59 = arith.constant 0 : index
    %115 = vector.load %arg5[%c0_58, %c0_59] : memref<576x64xbf16, #tpu.memory_space<vmem>>, vector<64x64xbf16>
    %cst_60 = arith.constant dense<0.000000e+00> : vector<2x64xf32>
    %116 = tpu.matmul %114, %115, %cst_60 {dimension_numbers = #tpu.dot_dimension_numbers<[1], [0], [0], [1], [0, 0, 1, 1], [], []>} : vector<2x64xbf16>, vector<64x64xbf16>, vector<2x64xf32> -> vector<2x64xf32>
    %117 = arith.addf %111, %116 : vector<2x64xf32>
    %118 = vector.extract_strided_slice %110 {offsets = [0, 0, 2, 0], sizes = [2, 1, 1, 64], strides = [1, 1, 1, 1]} : vector<2x5x5x64xf32> to vector<2x1x1x64xf32>
    %119 = vector.shape_cast %118 : vector<2x1x1x64xf32> to vector<2x64xf32>
    %120 = arith.truncf %119 : vector<2x64xf32> to vector<2x64xbf16>
    %c64_61 = arith.constant 64 : index
    %c0_62 = arith.constant 0 : index
    %121 = vector.load %arg5[%c64_61, %c0_62] : memref<576x64xbf16, #tpu.memory_space<vmem>>, vector<64x64xbf16>
    %cst_63 = arith.constant dense<0.000000e+00> : vector<2x64xf32>
    %122 = tpu.matmul %120, %121, %cst_63 {dimension_numbers = #tpu.dot_dimension_numbers<[1], [0], [0], [1], [0, 0, 1, 1], [], []>} : vector<2x64xbf16>, vector<64x64xbf16>, vector<2x64xf32> -> vector<2x64xf32>
    %123 = arith.addf %117, %122 : vector<2x64xf32>
    %124 = vector.extract_strided_slice %110 {offsets = [0, 0, 4, 0], sizes = [2, 1, 1, 64], strides = [1, 1, 1, 1]} : vector<2x5x5x64xf32> to vector<2x1x1x64xf32>
    %125 = vector.shape_cast %124 : vector<2x1x1x64xf32> to vector<2x64xf32>
    %126 = arith.truncf %125 : vector<2x64xf32> to vector<2x64xbf16>
    %c128_64 = arith.constant 128 : index
    %c0_65 = arith.constant 0 : index
    %127 = vector.load %arg5[%c128_64, %c0_65] : memref<576x64xbf16, #tpu.memory_space<vmem>>, vector<64x64xbf16>
    %cst_66 = arith.constant dense<0.000000e+00> : vector<2x64xf32>
    %128 = tpu.matmul %126, %127, %cst_66 {dimension_numbers = #tpu.dot_dimension_numbers<[1], [0], [0], [1], [0, 0, 1, 1], [], []>} : vector<2x64xbf16>, vector<64x64xbf16>, vector<2x64xf32> -> vector<2x64xf32>
    %129 = arith.addf %123, %128 : vector<2x64xf32>
    %130 = vector.extract_strided_slice %110 {offsets = [0, 2, 0, 0], sizes = [2, 1, 1, 64], strides = [1, 1, 1, 1]} : vector<2x5x5x64xf32> to vector<2x1x1x64xf32>
    %131 = vector.shape_cast %130 : vector<2x1x1x64xf32> to vector<2x64xf32>
    %132 = arith.truncf %131 : vector<2x64xf32> to vector<2x64xbf16>
    %c192_67 = arith.constant 192 : index
    %c0_68 = arith.constant 0 : index
    %133 = vector.load %arg5[%c192_67, %c0_68] : memref<576x64xbf16, #tpu.memory_space<vmem>>, vector<64x64xbf16>
    %cst_69 = arith.constant dense<0.000000e+00> : vector<2x64xf32>
    %134 = tpu.matmul %132, %133, %cst_69 {dimension_numbers = #tpu.dot_dimension_numbers<[1], [0], [0], [1], [0, 0, 1, 1], [], []>} : vector<2x64xbf16>, vector<64x64xbf16>, vector<2x64xf32> -> vector<2x64xf32>
    %135 = arith.addf %129, %134 : vector<2x64xf32>
    %136 = vector.extract_strided_slice %110 {offsets = [0, 2, 2, 0], sizes = [2, 1, 1, 64], strides = [1, 1, 1, 1]} : vector<2x5x5x64xf32> to vector<2x1x1x64xf32>
    %137 = vector.shape_cast %136 : vector<2x1x1x64xf32> to vector<2x64xf32>
    %138 = arith.truncf %137 : vector<2x64xf32> to vector<2x64xbf16>
    %c256_70 = arith.constant 256 : index
    %c0_71 = arith.constant 0 : index
    %139 = vector.load %arg5[%c256_70, %c0_71] : memref<576x64xbf16, #tpu.memory_space<vmem>>, vector<64x64xbf16>
    %cst_72 = arith.constant dense<0.000000e+00> : vector<2x64xf32>
    %140 = tpu.matmul %138, %139, %cst_72 {dimension_numbers = #tpu.dot_dimension_numbers<[1], [0], [0], [1], [0, 0, 1, 1], [], []>} : vector<2x64xbf16>, vector<64x64xbf16>, vector<2x64xf32> -> vector<2x64xf32>
    %141 = arith.addf %135, %140 : vector<2x64xf32>
    %142 = vector.extract_strided_slice %110 {offsets = [0, 2, 4, 0], sizes = [2, 1, 1, 64], strides = [1, 1, 1, 1]} : vector<2x5x5x64xf32> to vector<2x1x1x64xf32>
    %143 = vector.shape_cast %142 : vector<2x1x1x64xf32> to vector<2x64xf32>
    %144 = arith.truncf %143 : vector<2x64xf32> to vector<2x64xbf16>
    %c320_73 = arith.constant 320 : index
    %c0_74 = arith.constant 0 : index
    %145 = vector.load %arg5[%c320_73, %c0_74] : memref<576x64xbf16, #tpu.memory_space<vmem>>, vector<64x64xbf16>
    %cst_75 = arith.constant dense<0.000000e+00> : vector<2x64xf32>
    %146 = tpu.matmul %144, %145, %cst_75 {dimension_numbers = #tpu.dot_dimension_numbers<[1], [0], [0], [1], [0, 0, 1, 1], [], []>} : vector<2x64xbf16>, vector<64x64xbf16>, vector<2x64xf32> -> vector<2x64xf32>
    %147 = arith.addf %141, %146 : vector<2x64xf32>
    %148 = vector.extract_strided_slice %110 {offsets = [0, 4, 0, 0], sizes = [2, 1, 1, 64], strides = [1, 1, 1, 1]} : vector<2x5x5x64xf32> to vector<2x1x1x64xf32>
    %149 = vector.shape_cast %148 : vector<2x1x1x64xf32> to vector<2x64xf32>
    %150 = arith.truncf %149 : vector<2x64xf32> to vector<2x64xbf16>
    %c384_76 = arith.constant 384 : index
    %c0_77 = arith.constant 0 : index
    %151 = vector.load %arg5[%c384_76, %c0_77] : memref<576x64xbf16, #tpu.memory_space<vmem>>, vector<64x64xbf16>
    %cst_78 = arith.constant dense<0.000000e+00> : vector<2x64xf32>
    %152 = tpu.matmul %150, %151, %cst_78 {dimension_numbers = #tpu.dot_dimension_numbers<[1], [0], [0], [1], [0, 0, 1, 1], [], []>} : vector<2x64xbf16>, vector<64x64xbf16>, vector<2x64xf32> -> vector<2x64xf32>
    %153 = arith.addf %147, %152 : vector<2x64xf32>
    %154 = vector.extract_strided_slice %110 {offsets = [0, 4, 2, 0], sizes = [2, 1, 1, 64], strides = [1, 1, 1, 1]} : vector<2x5x5x64xf32> to vector<2x1x1x64xf32>
    %155 = vector.shape_cast %154 : vector<2x1x1x64xf32> to vector<2x64xf32>
    %156 = arith.truncf %155 : vector<2x64xf32> to vector<2x64xbf16>
    %c448_79 = arith.constant 448 : index
    %c0_80 = arith.constant 0 : index
    %157 = vector.load %arg5[%c448_79, %c0_80] : memref<576x64xbf16, #tpu.memory_space<vmem>>, vector<64x64xbf16>
    %cst_81 = arith.constant dense<0.000000e+00> : vector<2x64xf32>
    %158 = tpu.matmul %156, %157, %cst_81 {dimension_numbers = #tpu.dot_dimension_numbers<[1], [0], [0], [1], [0, 0, 1, 1], [], []>} : vector<2x64xbf16>, vector<64x64xbf16>, vector<2x64xf32> -> vector<2x64xf32>
    %159 = arith.addf %153, %158 : vector<2x64xf32>
    %160 = vector.extract_strided_slice %110 {offsets = [0, 4, 4, 0], sizes = [2, 1, 1, 64], strides = [1, 1, 1, 1]} : vector<2x5x5x64xf32> to vector<2x1x1x64xf32>
    %161 = vector.shape_cast %160 : vector<2x1x1x64xf32> to vector<2x64xf32>
    %162 = arith.truncf %161 : vector<2x64xf32> to vector<2x64xbf16>
    %c512 = arith.constant 512 : index
    %c0_82 = arith.constant 0 : index
    %163 = vector.load %arg5[%c512, %c0_82] : memref<576x64xbf16, #tpu.memory_space<vmem>>, vector<64x64xbf16>
    %cst_83 = arith.constant dense<0.000000e+00> : vector<2x64xf32>
    %164 = tpu.matmul %162, %163, %cst_83 {dimension_numbers = #tpu.dot_dimension_numbers<[1], [0], [0], [1], [0, 0, 1, 1], [], []>} : vector<2x64xbf16>, vector<64x64xbf16>, vector<2x64xf32> -> vector<2x64xf32>
    %165 = arith.addf %159, %164 : vector<2x64xf32>
    %c0_84 = arith.constant 0 : index
    %c0_85 = arith.constant 0 : index
    %166 = vector.load %arg6[%c0_84, %c0_85] : memref<1x64xf32, #tpu.memory_space<vmem>>, vector<1x64xf32>
    %167 = vector.broadcast %166 : vector<1x64xf32> to vector<2x64xf32>
    %168 = arith.addf %165, %167 : vector<2x64xf32>
    %169 = arith.truncf %168 : vector<2x64xf32> to vector<2x64xbf16>
    %c0_86 = arith.constant 0 : index
    %c0_87 = arith.constant 0 : index
    %170 = vector.load %arg7[%c0_86, %c0_87] : memref<64x512xbf16, #tpu.memory_space<vmem>>, vector<64x512xbf16>
    %cst_88 = arith.constant dense<0.000000e+00> : vector<2x512xf32>
    %171 = tpu.matmul %169, %170, %cst_88 {dimension_numbers = #tpu.dot_dimension_numbers<[1], [0], [0], [1], [0, 0, 1, 1], [], []>} : vector<2x64xbf16>, vector<64x512xbf16>, vector<2x512xf32> -> vector<2x512xf32>
    %c0_89 = arith.constant 0 : index
    %c0_90 = arith.constant 0 : index
    %172 = vector.load %arg8[%c0_89, %c0_90] : memref<1x512xf32, #tpu.memory_space<vmem>>, vector<1x512xf32>
    %173 = vector.broadcast %172 : vector<1x512xf32> to vector<2x512xf32>
    %174 = arith.addf %171, %173 : vector<2x512xf32>
    %cst_91 = arith.constant 0.000000e+00 : f32
    %175 = vector.broadcast %cst_91 : f32 to vector<2x512xf32>
    %176 = arith.maximumf %174, %175 : vector<2x512xf32>
    %177 = arith.truncf %176 : vector<2x512xf32> to vector<2x512xbf16>
    %c0_92 = arith.constant 0 : index
    %c0_93 = arith.constant 0 : index
    %178 = vector.load %arg9[%c0_92, %c0_93] : memref<512x128xbf16, #tpu.memory_space<vmem>>, vector<512x128xbf16>
    %cst_94 = arith.constant dense<0.000000e+00> : vector<2x128xf32>
    %179 = tpu.matmul %177, %178, %cst_94 {dimension_numbers = #tpu.dot_dimension_numbers<[1], [0], [0], [1], [0, 0, 1, 1], [], []>} : vector<2x512xbf16>, vector<512x128xbf16>, vector<2x128xf32> -> vector<2x128xf32>
    %c0_95 = arith.constant 0 : index
    %c0_96 = arith.constant 0 : index
    %180 = vector.load %arg10[%c0_95, %c0_96] : memref<1x128xf32, #tpu.memory_space<vmem>>, vector<1x128xf32>
    %181 = vector.broadcast %180 : vector<1x128xf32> to vector<2x128xf32>
    %182 = arith.addf %179, %181 : vector<2x128xf32>
    %c0_97 = arith.constant 0 : index
    %c0_98 = arith.constant 0 : index
    %183 = vector.load %arg11[%c0_97, %c0_98] : memref<2x128xf32, #tpu.memory_space<vmem>>, vector<2x128xf32>
    tpu.vector_store %arg11[%c0_97, %c0_98], %182 {strides = array<i32>} : memref<2x128xf32, #tpu.memory_space<vmem>>, vector<2x128xf32>,
    return
  }
}

</mosaic_0001>

<bundles_post_ra>
// kernel: dqn_forward.1
= control target key start
LH: loop header
LB: loop body
LE: loop exit
PB: predicated region body
PF: predicated region fallthrough
CT: control target
= control target key end

     0   :  { %vm124_vm0 = vcmask 1046528   ;;  %vm229_vm1 = vcmask 523264   ;;  %s6510_s0 = inlined_call_operand.vmem [shape: f32[2,9,9,64], index: 0, kind: input, shape index: {}]   ;;  %s6511_s1 = inlined_call_operand.vmem [shape: bf16[256,32], index: 1, kind: input, shape index: {}]   ;;  %s6512_s2 = inlined_call_operand.vmem [shape: f32[1,32], index: 2, kind: input, shape index: {}]   ;;  %s6513_s3 = inlined_call_operand.vmem [shape: bf16[512,64], index: 3, kind: input, shape index: {}]   ;;  %s6514_s4 = inlined_call_operand.vmem [shape: f32[1,64], index: 4, kind: input, shape index: {}]   ;;  %s6515_s5 = inlined_call_operand.vmem [shape: bf16[576,64], index: 5, kind: input, shape index: {}]   ;;  %s6516_s6 = inlined_call_operand.vmem [shape: f32[1,64], index: 6, kind: input, shape index: {}]   ;;  %s6517_s7 = inlined_call_operand.vmem [shape: bf16[64,512], index: 7, kind: input, shape index: {}]   ;;  %s6518_s8 = inlined_call_operand.vmem [shape: f32[1,512], index: 8, kind: input, shape index: {}]   ;;  %s6519_s9 = inlined_call_operand.vmem [shape: bf16[512,128], index: 9, kind: input, shape index: {}]   ;;  %s6520_s10 = inlined_call_operand.vmem [shape: f32[1,128], index: 10, kind: input, shape index: {}]   ;;  %s6521_s11 = inlined_call_operand.hbm [shape: f32[2,128], index: 11, kind: output, shape index: {}]  }
   0x1   :  { %v4865_v0 = vld [vmem:[%s6511_s1 + $0x38] sm:$0xff]   ;;  %v4867_v2 = vld [vmem:[%s6511_s1 + $0x30] sm:$0xff]   ;;  %v4869_v4 = vld [vmem:[%s6511_s1 + $0x28] sm:$0xff]  }
   0x2   :  { %v4866_v1 = vld [vmem:[%s6511_s1 + $0x18] sm:$0xff]   ;;  %4269 = vmatprep.subr.bf16.mxu0 %v4865_v0  ;;  %v4868_v3 = vld [vmem:[%s6511_s1 + $0x10] sm:$0xff]   ;;  %v4870_v5 = vld [vmem:[%s6511_s1 + $0x8] sm:$0xff]  }
   0x3   :  { %4293 = vmatprep.subr.bf16.mxu1 %v4866_v1  ;;  %4270 = vmatpush3.bf16.msra.mxu0 %v4865_v0  ;;  %v4871_v6 = vld [vmem:[%s6511_s1 + $0x20] sm:$0xff]   ;;  %v41_v9 = vld [vmem:[%s6510_s0 + $0x8] sm:$0x1]  ;;  %v5124_v10 = vld [vmem:[%s6510_s0 + $0x10] sm:$0xff] }
   0x4   :  { %4294 = vmatpush3.bf16.msra.mxu1 %v4866_v1  ;;  %4271 = vmatprep.subr.bf16.mxu0 %v4867_v2  ;;  %v4872_v7 = vld [vmem:[%s6511_s1] sm:$0xff]   ;;  %v43_v11 = vld [vmem:[%s6510_s0 + $0x18] sm:$0x1]  ;;  %v45_v13 = vld [vmem:[%s6510_s0 + $0x28] sm:$0x1]  ;;  %v126_v19 = vrot.slane %v41_v9, 1 }
   0x5   :  { %4295 = vmatprep.subr.bf16.mxu1 %v4868_v3  ;;  %v40_v8 = vld [vmem:[%s6510_s0] sm:$0xff]  ;;  %v5141_v16 = vld [vmem:[%s6510_s0 + $0x30] sm:$0xff]  ;;  %v47_v17 = vld [vmem:[%s6510_s0 + $0x38] sm:$0x1]  ;;  %v128_v20 = vrot.slane %v5124_v10, 1  ;;  %v129_v22 = vrot.slane %v43_v11, 1 }
   0x6   :  { %v5132_v12 = vld [vmem:[%s6510_s0 + $0x20] sm:$0xff]  ;;  %v125_v14 = vrot.slane %v40_v8, 1  ;;  %v76_v15 = vpack.c.bf16 %v5124_v10, %v40_v8  ;;  %v49_v21 = vld [vmem:[%s6510_s0 + $0x48] sm:$0x1]  ;;  %v132_v24 = vrot.slane %v45_v13, 1  ;;  %v134_v25 = vrot.slane %v5141_v16, 1 }
   0x7   :  { %4272 = vmatpush3.bf16.msra.mxu0 %v4867_v2  ;;  %v5149_v18 = vld [vmem:[%s6510_s0 + $0x40] sm:$0xff]  ;;  %v131_v23 = vrot.slane %v5132_v12, 1  ;;  %v135_v27 = vrot.slane %v47_v17, 1  ;;  %v138_v29 = vrot.slane %v49_v21, 1  ;;  %v4873_v30 = vld [vmem:[%s6511_s1 + $0x58] sm:$0xff]   ;;  %v5164_v31 = vsel %vm124_vm0, %v128_v20, %v129_v22  ;;  %v5181_v37 = vld [vmem:[%s6510_s0 + $0x50] sm:$0xff] }
   0x8   :  { %4296 = vmatpush3.bf16.msra.mxu1 %v4868_v3  ;;  %4273 = vmatprep.subr.bf16.mxu0 %v4869_v4  ;;  %v127_v26 = vsel %vm124_vm0, %v125_v14, %v126_v19  ;;  %v137_v28 = vrot.slane %v5149_v18, 1  ;;  %v77_v35 = vpack.c.bf16 %v5141_v16, %v5132_v12  ;;  %v4874_v36 = vld [vmem:[%s6511_s1 + $0x78] sm:$0xff]   ;;  %v140_v41 = vrot.slane %v5181_v37, 1  ;;  %v5195_v43 = vld [vmem:[%s6510_s0 + $0x60] sm:$0xff]  ;;  %v53_v44 = vld [vmem:[%s6510_s0 + $0x68] sm:$0x1] }
   0x9   :  { %4297 = vmatprep.subr.bf16.mxu1 %v4870_v5  ;;  %4301 = vmatprep.mubr.msk.bf16.mxu1 %vm229_vm1, %v76_v15  ;;  %v5167_v32 = vsel %vm124_vm0, %v131_v23, %v132_v24  ;;  %v5170_v33 = vsel %vm124_vm0, %v134_v25, %v135_v27  ;;  %v189_v34 = vpack.c.bf16 %v5164_v31, %v127_v26  ;;  %v51_v38 = vld [vmem:[%s6510_s0 + $0x58] sm:$0x1]  ;;  %v5203_v45 = vld [vmem:[%s6510_s0 + $0x70] sm:$0xff]  ;;  %v143_v47 = vrot.slane %v5195_v43, 1  ;;  %v5241_v60 = vld [vmem:[%s6510_s0 + $0xa0] sm:$0xff] }
   0xa   :  { %v5187_v39 = vsel %vm124_vm0, %v137_v28, %v138_v29  ;;  %v190_v40 = vpack.c.bf16 %v5170_v33, %v5167_v32  ;;  %v141_v42 = vrot.slane %v51_v38, 1  ;;  %v55_v46 = vld [vmem:[%s6510_s0 + $0x78] sm:$0x1]  ;;  %v144_v48 = vrot.slane %v53_v44, 1  ;;  %v4875_v50 = vld [vmem:[%s6511_s1 + $0x50] sm:$0xff]   ;;  %v4877_v8 = vld [vmem:[%s6511_s1 + $0x48] sm:$0xff]  }
   0xb   :  { %4274 = vmatpush3.bf16.msra.mxu0 %v4869_v4  ;;  %4277 = vmatprep.mubr.msk.bf16.mxu0 %vm229_vm1, %v189_v34  ;;  %v146_v49 = vrot.slane %v5203_v45, 1  ;;  %v78_v52 = vpack.c.bf16 %v5181_v37, %v5149_v18  ;;  %v147_v53 = vrot.slane %v55_v46, 1  ;;  %v4876_v54 = vld [vmem:[%s6511_s1 + $0x70] sm:$0xff]   ;;  %v59_v59 = vld [vmem:[%s6510_s0 + $0x98] sm:$0x1]  ;;  %v152_v0 = vrot.slane %v5241_v60, 1 }
   0xc   :  { %4298 = vmatpush3.bf16.msra.mxu1 %v4870_v5  ;;  %4275 = vmatprep.subr.bf16.mxu0 %v4871_v6  ;;  %v5215_v51 = vsel %vm124_vm0, %v140_v41, %v141_v42  ;;  %v5226_v56 = vsel %vm124_vm0, %v143_v47, %v144_v48  ;;  %v58_v57 = vld [vmem:[%s6510_s0 + $0x90] sm:$0xff]  ;;  %v61_v61 = vld [vmem:[%s6510_s0 + $0xa8] sm:$0x1]  ;;  %v150_v63 = vrot.slane %v59_v59, 1  ;;  %v63_v3 = vld [vmem:[%s6510_s0 + $0xb8] sm:$0x1]  ;;  %v79_v15 = vpack.c.bf16 %v5203_v45, %v5195_v43 }
   0xd   :  { %4299 = vmatprep.subr.bf16.mxu1 %v4872_v7  ;;  %v191_v55 = vpack.c.bf16 %v5215_v51, %v5187_v39  ;;  %v5233_v58 = vsel %vm124_vm0, %v146_v49, %v147_v53  ;;  %v149_v62 = vrot.slane %v58_v57, 1  ;;  %v153_v1 = vrot.slane %v61_v61, 1  ;;  %v5251_v2 = vld [vmem:[%s6510_s0 + $0xb0] sm:$0xff]  ;;  %v5262_v5 = vld [vmem:[%s6510_s0 + $0xc0] sm:$0xff]  ;;  %v4878_v20 = vld [vmem:[%s6511_s1 + $0x68] sm:$0xff]  }
   0xe   :  { %v192_v4 = vpack.c.bf16 %v5233_v58, %v5226_v56  ;;  %v156_v13 = vrot.slane %v63_v3, 1  ;;  %v158_v14 = vrot.slane %v5262_v5, 1  ;;  %v80_v21 = vpack.c.bf16 %v5241_v60, %v58_v57  ;;  %v5286_v22 = vld [vmem:[%s6510_s0 + $0xd0] sm:$0xff]  ;;  %v67_v23 = vld [vmem:[%s6510_s0 + $0xd8] sm:$0x1]  ;;  %v5294_v24 = vld [vmem:[%s6510_s0 + $0xe0] sm:$0xff] }
   0xf   :  { %4276 = vmatpush3.bf16.msra.mxu0 %v4871_v6  ;;  %v65_v6 = vld [vmem:[%s6510_s0 + $0xc8] sm:$0x1]  ;;  %v151_v9 = vsel %vm124_vm0, %v149_v62, %v150_v63  ;;  %v5273_v11 = vsel %vm124_vm0, %v152_v0, %v153_v1  ;;  %v161_v26 = vrot.slane %v5286_v22, 1  ;;  %v162_v27 = vrot.slane %v67_v23, 1  ;;  %v5304_v29 = vld [vmem:[%s6510_s0 + $0xf0] sm:$0xff]  ;;  %v4879_v44 = vld [vmem:[%s6511_s1 + $0x40] sm:$0xff]  }
  0x10   :  { %4300 = vmatpush3.bf16.msra.mxu1 %v4872_v7  ;;  %4317 = vmatprep.subr.bf16.mxu0 %v4873_v30  ;;  %v155_v7 = vrot.slane %v5251_v2, 1  ;;  %v193_v17 = vpack.c.bf16 %v5273_v11, %v151_v9  ;;  %v159_v19 = vrot.slane %v65_v6, 1  ;;  %v69_v25 = vld [vmem:[%s6510_s0 + $0xe8] sm:$0x1]  ;;  %v164_v28 = vrot.slane %v5294_v24, 1  ;;  %v4880_v49 = vld [vmem:[%s6511_s1 + $0x60] sm:$0xff]  }
  0x11   :  { %4341 = vmatprep.subr.bf16.mxu1 %v4874_v36  ;;  %v71_v34 = vld [vmem:[%s6510_s0 + $0xf8] sm:$0x1]  ;;  %v167_v41 = vrot.slane %v5304_v29, 1  ;;  %v163_v46 = vsel %vm124_vm0, %v161_v26, %v162_v27  ;;  %v57_v53 = vld [vmem:[%s6510_s0 + $0x88] sm:$0x1]  ;;  %v74_v59 = vld [vmem:[%s6510_s0 + $0x110] sm:$0xff]  ;;  %v81_v62 = vpack.c.bf16 %v5262_v5, %v5251_v2  ;;  %v82_v1 = vpack.c.bf16 %v5294_v24, %v5286_v22 }
  0x12   :  { %4278 = vmatmul.mubr.msk.bf16.vlgmr.msra.gmra.mxu0 %vm229_vm1, %v190_v40  ;;  %v157_v38 = vsel %vm124_vm0, %v155_v7, %v156_v13  ;;  %v5322_v40 = vsel %vm124_vm0, %v158_v14, %v159_v19  ;;  %v168_v42 = vrot.slane %v71_v34, 1  ;;  %v678_v57 = vrot.slane %v57_v53, 1  ;;  %v75_v61 = vld [vmem:[%s6510_s0 + $0x118] sm:$0x1] }
  0x13   :  { %4302 = vmatmul.mubr.msk.bf16.vlgmr.msra.gmra.mxu1 %vm229_vm1, %v77_v35  ;;  %4318 = vmatpush3.bf16.msra.mxu0 %v4873_v30  ;;  %v165_v30 = vrot.slane %v69_v25, 1  ;;  %v5313_v35 = vld [vmem:[%s6510_s0 + $0x100] sm:$0xff]  ;;  %v680_v0 = vrot.slane %v74_v59, 1  ;;  %v681_v3 = vrot.slane %v75_v61, 1  ;;  %v496_v9 = vpack.c.bf16 %v5132_v12, %v5124_v10 }
  0x14   :  { %4342 = vmatpush3.bf16.msra.mxu1 %v4874_v36  ;;  %4281 = vmatprep.mubr.msk.bf16.mxu0 %vm229_vm1, %v191_v55  ;;  %v73_v36 = vld [vmem:[%s6510_s0 + $0x108] sm:$0x1]  ;;  %v170_v48 = vrot.slane %v5313_v35, 1  ;;  %v685_v13 = vpack.c.bf16 %v5167_v32, %v5164_v31  ;;  %v497_v14 = vpack.c.bf16 %v5149_v18, %v5141_v16  ;;  %v498_v10 = vpack.c.bf16 %v5195_v43, %v5181_v37 }
  0x15   :  { %4305 = vmatprep.mubr.msk.bf16.mxu1 %vm229_vm1, %v78_v52  ;;  %4319 = vmatprep.subr.bf16.mxu0 %v4875_v50  ;;  %v166_v47 = vsel %vm124_vm0, %v164_v28, %v165_v30  ;;  %v56_v52 = vld [vmem:[%s6510_s0 + $0x80] sm:$0xff]  ;;  %v687_v12 = vpack.c.bf16 %v5226_v56, %v5215_v51  ;;  %v500_v32 = vpack.c.bf16 %v5251_v2, %v5241_v60 }
  0x16   :  { %4343 = vmatprep.subr.bf16.mxu1 %v4876_v54  ;;  %v677_v55 = vrot.slane %v56_v52, 1  ;;  %v195_v63 = vpack.c.bf16 %v166_v47, %v163_v46  ;;  %v499_v16 = vpack.c.bf16 %v56_v52, %v5203_v45  ;;  %v501_v37 = vpack.c.bf16 %v5286_v22, %v5262_v5 }
  0x17   :  { %4320 = vmatpush3.bf16.msra.mxu0 %v4875_v50  ;;  %v171_v50 = vrot.slane %v73_v36, 1  ;;  %v502_v43 = vpack.c.bf16 %v5304_v29, %v5294_v24  ;;  %v682_v51 = vsel %vm124_vm0, %v680_v0, %v681_v3  ;;  %v503_v56 = vpack.c.bf16 %v74_v59, %v5313_v35 }
  0x18   :  { %4344 = vmatpush3.bf16.msra.mxu1 %v4876_v54  ;;  %4321 = vmatprep.subr.bf16.mxu0 %v4877_v8  ;;  %v194_v54 = vpack.c.bf16 %v5322_v40, %v157_v38  ;;  %v679_v31 = vsel %vm124_vm0, %v677_v55, %v678_v57 }
  0x19   :  { %4345 = vmatprep.subr.bf16.mxu1 %v4878_v20  ;;  %v172_v6 = vsel %vm124_vm0, %v170_v48, %v171_v50  ;;  %v688_v18 = vpack.c.bf16 %v679_v31, %v5233_v58 }
  0x1a   :  { %4282 = vmatmul.mubr.msk.bf16.gmra.mxu0 %vm229_vm1, %v192_v4  ;;  %v169_v4 = vsel %vm124_vm0, %v167_v41, %v168_v42  ;;  %v692_v58 = vpack.c.bf16 %v682_v51, %v172_v6 }
  0x1b   :  { %4306 = vmatmul.mubr.msk.bf16.gmra.mxu1 %vm229_vm1, %v79_v15  ;;  %4285 = vmatprep.mubr.msk.bf16.mxu0 %vm229_vm1, %v193_v17  ;;  %v196_v7 = vpack.c.bf16 %v172_v6, %v169_v4  ;;  %v686_v15 = vpack.c.bf16 %v5187_v39, %v5170_v33  ;;  %v689_v33 = vpack.c.bf16 %v157_v38, %v5273_v11 }
  0x1c   :  { %4309 = vmatprep.mubr.msk.bf16.mxu1 %vm229_vm1, %v80_v21  ;;  %4322 = vmatpush3.bf16.msra.mxu0 %v4877_v8  ;;  %v83_v8 = vpack.c.bf16 %v5313_v35, %v5304_v29  ;;  %v690_v39 = vpack.c.bf16 %v163_v46, %v5322_v40  ;;  %v691_v45 = vpack.c.bf16 %v169_v4, %v166_v47 }
  0x1d   :  { %4346 = vmatpush3.bf16.msra.mxu1 %v4878_v20  ;;  %4323 = vmatprep.subr.bf16.mxu0 %v4879_v44 }
  0x1e   :  { %4347 = vmatprep.subr.bf16.mxu1 %v4880_v49 }
  0x20   :  { %4324 = vmatpush3.bf16.msra.mxu0 %v4879_v44 }
  0x21   :  { %4348 = vmatpush3.bf16.msra.mxu1 %v4880_v49 }
  0x22   :  { %4286 = vmatmul.mubr.msk.bf16.gmra.mxu0 %vm229_vm1, %v194_v54 }
  0x23   :  { %4310 = vmatmul.mubr.msk.bf16.gmra.mxu1 %vm229_vm1, %v81_v62  ;;  %4289 = vmatprep.mubr.msk.bf16.mxu0 %vm229_vm1, %v195_v63 }
  0x24   :  { %4313 = vmatprep.mubr.msk.bf16.mxu1 %vm229_vm1, %v82_v1 }
  0x2a   :  { %4290 = vmatmul.mubr.msk.bf16.gmra.mxu0 %vm229_vm1, %v196_v7 }
  0x2b   :  { %4314 = vmatmul.mubr.msk.bf16.gmra.mxu1 %vm229_vm1, %v83_v8  ;;  %4325 = vmatprep.mubr.msk.bf16.mxu0 %vm229_vm1, %v496_v9 }
  0x2c   :  { %4349 = vmatprep.mubr.msk.bf16.mxu1 %vm229_vm1, %v685_v13 }
  0x32   :  { %4326 = vmatmul.mubr.msk.bf16.vlgmr.msra.gmra.mxu0 %vm229_vm1, %v497_v14 }
  0x33   :  { %4350 = vmatmul.mubr.msk.bf16.vlgmr.msra.gmra.mxu1 %vm229_vm1, %v686_v15  ;;  %4329 = vmatprep.mubr.msk.bf16.mxu0 %vm229_vm1, %v498_v10 }
  0x34   :  { %4353 = vmatprep.mubr.msk.bf16.mxu1 %vm229_vm1, %v687_v12 }
  0x3a   :  { %4330 = vmatmul.mubr.msk.bf16.gmra.mxu0 %vm229_vm1, %v499_v16 }
  0x3b   :  { %4354 = vmatmul.mubr.msk.bf16.gmra.mxu1 %vm229_vm1, %v688_v18  ;;  %4333 = vmatprep.mubr.msk.bf16.mxu0 %vm229_vm1, %v500_v32 }
  0x3c   :  { %4357 = vmatprep.mubr.msk.bf16.mxu1 %vm229_vm1, %v689_v33 }
  0x42   :  { %4334 = vmatmul.mubr.msk.bf16.gmra.mxu0 %vm229_vm1, %v501_v37 }
  0x43   :  { %4358 = vmatmul.mubr.msk.bf16.gmra.mxu1 %vm229_vm1, %v690_v39  ;;  %4337 = vmatprep.mubr.msk.bf16.mxu0 %vm229_vm1, %v502_v43 }
  0x44   :  { %4361 = vmatprep.mubr.msk.bf16.mxu1 %vm229_vm1, %v691_v45 }
  0x4a   :  { %4338 = vmatmul.mubr.msk.bf16.gmra.mxu0 %vm229_vm1, %v503_v56 }
  0x4b   :  { %4362 = vmatmul.mubr.msk.bf16.gmra.mxu1 %vm229_vm1, %v692_v58 }
  0x4c   :  { %16 = vsyncpa [#allocation3], 0  ;;  %v4881_v60 = vld [vmem:[%s6513_s3 + $0x48] sm:$0xff]   ;;  %v5027_v2 = vmov 0.0   ;;  %v4882_v5 = vld [vmem:[%s6513_s3 + $0x40] sm:$0xff]   ;;  %vm5028_vm2 = vmmov 0  }
  0x4d   :  { %4365 = vmatprep.subr.bf16.mxu0 %v5027_v2  ;;  %4857 = vmatprep.subr.bf16.mxu1 %v5027_v2  ;;  %v5454_v18 = vld [vmem:[%s6512_s2] ss:$0 sm:$0xff]  ;;  %vm921_vm3 = vcmask 261120   ;;  %vm2473_vm4 = vcmask 1041409  }
  0x4e   :  { %4366 = vmatpush3.bf16.msra.mxu0 %v4881_v60  ;;  %4859 = vmatpush3.bf16.msra.mxu1 %v4881_v60 }
  0x4f   :  { %4367 = vmatprep.subr.bf16.mxu0 %v5027_v2  ;;  %4858 = vmatprep.subr.bf16.mxu1 %v5027_v2 }
  0x50   :  { %4369 = vmatprep.mubr.msk.bf16.mxu0 %vm5028_vm2, %v5027_v2  ;;  %4385 = vmatprep.mubr.msk.bf16.mxu1 %vm5028_vm2, %v5027_v2 }
  0x52   :  { %4368 = vmatpush3.bf16.msra.mxu0 %v4882_v5  ;;  %4860 = vmatpush3.bf16.msra.mxu1 %v4882_v5 }
  0x53   :  { %4389 = vmatprep.subr.bf16.mxu1 %v5027_v2  ;;  %4413 = vmatprep.subr.bf16.mxu0 %v5027_v2 }
  0xd2   :  { %v4279_v11 = vpop.f32.mrf.mxu0 }
  0xd3   :  { %v4303_v17 = vpop.f32.mrf.mxu1 }
  0xd4   :  { %v288_v19 = vpop.f32.mrf.mxu0  ;;  %v442_v4 = vadd.f32 %v4303_v17, %v4279_v11 }
  0xd5   :  { %v433_v20 = vpop.f32.mrf.mxu1 }
  0xd6   :  { %v5419_v21 = vadd.f32 %v433_v20, %v288_v19  ;;  %v4280_v22 = vpop.f32.mrf.mxu0  ;;  %v4884_v19 = vld [vmem:[%s6513_s3 + $0x88] sm:$0xff]  }
  0xd7   :  { %v4304_v23 = vpop.f32.mrf.mxu1 }
  0xd8   :  { %v291_v24 = vpop.f32.mrf.mxu0  ;;  %v445_v33 = vadd.f32 %v4304_v23, %v4280_v22 }
  0xd9   :  { %v436_v25 = vpop.f32.mrf.mxu1 }
  0xda   :  { %v4283_v26 = vpop.f32.mrf.mxu0  ;;  %v437_v14 = vadd.f32 %v436_v25, %v291_v24 }
  0xdb   :  { %v4307_v27 = vpop.f32.mrf.mxu1 }
  0xdc   :  { %v458_v28 = vadd.f32 %v4307_v27, %v4283_v26  ;;  %v304_v29 = vpop.f32.mrf.mxu0 }
  0xdd   :  { %v449_v30 = vpop.f32.mrf.mxu1 }
  0xde   :  { %v4284_v34 = vpop.f32.mrf.mxu0  ;;  %v450_v37 = vadd.f32 %v449_v30, %v304_v29 }
  0xdf   :  { %v4308_v35 = vpop.f32.mrf.mxu1 }
  0xe0   :  { %v461_v36 = vadd.f32 %v4308_v35, %v4284_v34  ;;  %v307_v38 = vpop.f32.mrf.mxu0 }
  0xe1   :  { %v452_v40 = vpop.f32.mrf.mxu1 }
  0xe2   :  { %v5421_v41 = vpop.f32.mrf.mxu0  ;;  %v453_v20 = vadd.f32 %v452_v40, %v307_v38  ;;  %v4886_v38 = vld [vmem:[%s6513_s3 + $0x80] sm:$0xff]  }
  0xe3   :  { %v5423_v42 = vpop.f32.mrf.mxu1 }
  0xe4   :  { %v320_v44 = vpop.f32.mrf.mxu0 }
  0xe5   :  { %v465_v46 = vpop.f32.mrf.mxu1 }
  0xe6   :  { %v5425_v47 = vadd.f32 %v465_v46, %v320_v44  ;;  %v5427_v48 = vpop.f32.mrf.mxu0 }
  0xe7   :  { %v5429_v49 = vpop.f32.mrf.mxu1 }
  0xe8   :  { %v5431_v50 = vpop.f32.mrf.mxu0 }
  0xe9   :  { %v5433_v52 = vpop.f32.mrf.mxu1 }
  0xea   :  { %v4291_v53 = vpop.f32.mrf.mxu0 }
  0xeb   :  { %v4315_v54 = vpop.f32.mrf.mxu1 }
  0xec   :  { %v5435_v55 = vadd.f32 %v4315_v54, %v4291_v53  ;;  %v5437_v57 = vpop.f32.mrf.mxu0  ;;  %v477_v54 = vadd.f32 %v5429_v49, %v5427_v48 }
  0xed   :  { %v5439_v59 = vpop.f32.mrf.mxu1 }
  0xee   :  { %v4292_v61 = vpop.f32.mrf.mxu0 }
  0xef   :  { %v4316_v62 = vpop.f32.mrf.mxu1 }
  0xf0   :  { %v5441_v63 = vadd.f32 %v4316_v62, %v4292_v61  ;;  %v5443_v0 = vpop.f32.mrf.mxu0 }
  0xf1   :  { %v5445_v1 = vpop.f32.mrf.mxu1 }
  0xf2   :  { %v4327_v3 = vpop.f32.mrf.mxu0 }
  0xf3   :  { %v4351_v6 = vpop.f32.mrf.mxu1  ;;  %v659_v8 = vadd.f32 %v4327_v3, %v442_v4 }
  0xf4   :  { %v5447_v7 = vpop.f32.mrf.mxu0 }
  0xf5   :  { %v5449_v9 = vpop.f32.mrf.mxu1  ;;  %v848_v12 = vadd.f32 %v4351_v6, %v659_v8  ;;  %v469_v8 = vadd.f32 %v5433_v52, %v5431_v50  ;;  %v474_v52 = vadd.f32 %v5423_v42, %v5421_v41 }
  0xf6   :  { %v4328_v13 = vpop.f32.mrf.mxu0 }
  0xf7   :  { %v4352_v15 = vpop.f32.mrf.mxu1  ;;  %v5457_v51 = vadd.f32 %v5454_v18, %v848_v12  ;;  %v660_v56 = vadd.f32 %v4328_v13, %v445_v33 }
  0xf8   :  { %v597_v10 = vpop.f32.mrf.mxu0 }
  0xf9   :  { %v658_v31 = vadd.f32 %v597_v10, %v437_v14  ;;  %v786_v16 = vpop.f32.mrf.mxu1  ;;  %v849_v27 = vadd.f32 %v4352_v15, %v660_v56 }
  0xfa   :  { %v4331_v32 = vpop.f32.mrf.mxu0 }
  0xfb   :  { %v847_v39 = vadd.f32 %v786_v16, %v658_v31  ;;  %v4355_v43 = vpop.f32.mrf.mxu1  ;;  %v663_v11 = vadd.f32 %v4331_v32, %v458_v28  ;;  %v5486_v61 = vadd.f32 %v5454_v18, %v849_v27 }
  0xfc   :  { %v610_v45 = vpop.f32.mrf.mxu0 }
  0xfd   :  { %v5460_v58 = vadd.f32 %v5454_v18, %v847_v39  ;;  %v661_v60 = vadd.f32 %v610_v45, %v450_v37  ;;  %v799_v5 = vpop.f32.mrf.mxu1  ;;  %v852_v28 = vadd.f32 %v4355_v43, %v663_v11  ;;  %v482_v39 = vadd.f32 %v5439_v59, %v5437_v57 }
  0xfe   :  { %v4332_v17 = vpop.f32.mrf.mxu0 }
  0xff   :  { %v5467_v22 = vpack.c.bf16 %v5457_v51, %v5460_v58  ;;  %v850_v23 = vadd.f32 %v799_v5, %v661_v60  ;;  %v4356_v24 = vpop.f32.mrf.mxu1  ;;  %v664_v25 = vadd.f32 %v4332_v17, %v461_v36  ;;  %v5494_v4 = vadd.f32 %v5454_v18, %v852_v28 }
 0x100   :  { %v613_v26 = vpop.f32.mrf.mxu0  ;;  %v485_v17 = vadd.f32 %v5445_v1, %v5443_v0 }
 0x101   :  { %v662_v29 = vadd.f32 %v613_v26, %v453_v20  ;;  %v802_v30 = vpop.f32.mrf.mxu1  ;;  %4370 = vmatmul.mubr.msk.bf16.vlgmr.msra.gmra.mxu0 %vm921_vm3, %v5467_v22  ;;  %v853_v34 = vadd.f32 %v4356_v24, %v664_v25  ;;  %v5477_v36 = vadd.f32 %v5454_v18, %v850_v23 }
 0x102   :  { %v4335_v35 = vpop.f32.mrf.mxu0  ;;  %4373 = vmatprep.mubr.msk.bf16.mxu0 %vm5028_vm2, %v5027_v2  ;;  %4414 = vmatpush3.bf16.msra.mxu0 %v4884_v19 }
 0x103   :  { %v851_v40 = vadd.f32 %v802_v30, %v662_v29  ;;  %v4359_v44 = vpop.f32.mrf.mxu1  ;;  %4415 = vmatprep.subr.bf16.mxu0 %v5027_v2  ;;  %v876_v46 = vadd.f32 %v5454_v18, %v853_v34  ;;  %v5500_v13 = vpack.c.bf16 %v5477_v36, %v5486_v61  ;;  %v667_v45 = vadd.f32 %v4335_v35, %v474_v52  ;;  %v4883_v35 = vld [vmem:[%s6513_s3 + $0x8] sm:$0xff]   ;;  %v4898_v52 = vld [vmem:[%s6513_s3 + $0x60] sm:$0xff]  }
 0x104   :  { %v5481_v53 = vpop.f32.mrf.mxu0  ;;  %v657_v29 = vadd.f32 %v5447_v7, %v5419_v21  ;;  %v4885_v7 = vld [vmem:[%s6513_s3] sm:$0xff]  }
 0x105   :  { %v5489_v62 = vadd.f32 %v5454_v18, %v851_v40  ;;  %v5491_v3 = vpop.f32.mrf.mxu1  ;;  %v856_v23 = vadd.f32 %v4359_v44, %v667_v45  ;;  %v4887_v44 = vld [vmem:[%s6513_s3 + $0xc8] sm:$0xff]  }
 0x106   :  { %v4336_v6 = vpop.f32.mrf.mxu0  ;;  %4416 = vmatpush3.bf16.msra.mxu0 %v4886_v38  ;;  %v846_v21 = vadd.f32 %v5449_v9, %v657_v29 }
 0x107   :  { %v668_v48 = vadd.f32 %v4336_v6, %v477_v54  ;;  %v4360_v49 = vpop.f32.mrf.mxu1  ;;  %4461 = vmatprep.subr.bf16.mxu0 %v5027_v2  ;;  %v5505_v15 = vpack.c.bf16 %v5494_v4, %v5489_v62  ;;  %v4889_v6 = vld [vmem:[%s6513_s3 + $0x58] sm:$0xff]  }
 0x108   :  { %v629_v14 = vpop.f32.mrf.mxu0  ;;  %v869_v9 = vadd.f32 %v5454_v18, %v846_v21 }
 0x109   :  { %v857_v10 = vadd.f32 %v4360_v49, %v668_v48  ;;  %v666_v12 = vadd.f32 %v629_v14, %v469_v8  ;;  %v818_v31 = vpop.f32.mrf.mxu1  ;;  %4374 = vmatmul.mubr.msk.bf16.gmra.mxu0 %vm921_vm3, %v5500_v13  ;;  %v5605_v48 = vpack.c.bf16 %v5489_v62, %v5477_v36  ;;  %v4893_v49 = vld [vmem:[%s6513_s3 + $0x98] sm:$0xff]   ;;  %v4892_v14 = vld [vmem:[%s6513_s3 + $0x10] sm:$0xff]  }
 0x10a   :  { %v4339_v50 = vpop.f32.mrf.mxu0  ;;  %4377 = vmatprep.mubr.msk.bf16.mxu0 %vm5028_vm2, %v5027_v2  ;;  %v5578_v54 = vpack.c.bf16 %v5460_v58, %v869_v9  ;;  %v665_v58 = vadd.f32 %v5481_v53, %v5425_v47 }
 0x10b   :  { %v5514_v16 = vadd.f32 %v5454_v18, %v857_v10  ;;  %v855_v32 = vadd.f32 %v818_v31, %v666_v12  ;;  %v671_v33 = vadd.f32 %v4339_v50, %v5435_v55  ;;  %v4363_v37 = vpop.f32.mrf.mxu1  ;;  %v4894_v10 = vld [vmem:[%s6513_s3 + $0x90] sm:$0xff]   ;;  %v4895_v12 = vld [vmem:[%s6513_s3 + $0xd8] sm:$0xff]   ;;  %v4897_v31 = vld [vmem:[%s6513_s3 + $0x68] sm:$0xff]  }
 0x10c   :  { %v642_v43 = vpop.f32.mrf.mxu0  ;;  %v854_v8 = vadd.f32 %v5491_v3, %v665_v58  ;;  %v4896_v50 = vld [vmem:[%s6513_s3 + $0xd0] sm:$0xff]  }
 0x10d   :  { %v5520_v56 = vpack.c.bf16 %v5514_v16, %v876_v46  ;;  %v5523_v60 = vadd.f32 %v5454_v18, %v855_v32  ;;  %v860_v5 = vadd.f32 %v4363_v37, %v671_v33  ;;  %v831_v41 = vpop.f32.mrf.mxu1  ;;  %v669_v42 = vadd.f32 %v642_v43, %v482_v39  ;;  %v4901_v32 = vld [vmem:[%s6513_s3 + $0xa8] sm:$0xff]   ;;  %v4900_v33 = vld [vmem:[%s6513_s3 + $0x20] sm:$0xff]   ;;  %v4905_v43 = vld [vmem:[%s6513_s3 + $0x78] sm:$0xff]  }
 0x10e   :  { %v4340_v11 = vpop.f32.mrf.mxu0  ;;  %v5575_v46 = vpack.c.bf16 %v5486_v61, %v5457_v51  ;;  %v4888_v51 = vld [vmem:[%s6513_s3 + $0xc0] sm:$0xff]   ;;  %v4890_v61 = vld [vmem:[%s6513_s3 + $0x50] sm:$0xff]   ;;  %v877_v47 = vadd.f32 %v5454_v18, %v854_v8  ;;  %v4903_v39 = vld [vmem:[%s6513_s3 + $0xe8] sm:$0xff]  }
 0x10f   :  { %v5529_v55 = vpack.c.bf16 %v5523_v60, %v5489_v62  ;;  %v5532_v57 = vadd.f32 %v5454_v18, %v860_v5  ;;  %v672_v59 = vadd.f32 %v4340_v11, %v5441_v63  ;;  %v4364_v19 = vpop.f32.mrf.mxu1  ;;  %v858_v24 = vadd.f32 %v831_v41, %v669_v42  ;;  %v4902_v37 = vld [vmem:[%s6513_s3 + $0xa0] sm:$0xff]   ;;  %v4906_v41 = vld [vmem:[%s6513_s3 + $0x70] sm:$0xff]  }
 0x110   :  { %v645_v20 = vpop.f32.mrf.mxu0  ;;  %v879_v63 = vadd.f32 %v5454_v18, %v856_v23  ;;  %v5622_v62 = vpack.c.bf16 %v877_v47, %v5477_v36 }
 0x111   :  { %v861_v25 = vadd.f32 %v4364_v19, %v672_v59  ;;  %v670_v26 = vadd.f32 %v645_v20, %v485_v17  ;;  %4378 = vmatmul.mubr.msk.bf16.gmra.mxu0 %vm921_vm3, %v5529_v55  ;;  %v834_v27 = vpop.f32.mrf.mxu1  ;;  %v881_v30 = vadd.f32 %v5454_v18, %v858_v24 }
 0x112   :  { %4381 = vmatprep.mubr.msk.bf16.mxu0 %vm5028_vm2, %v5027_v2  ;;  %v5552_v38 = vpack.c.bf16 %v5514_v16, %v879_v63  ;;  %v5619_v53 = vpack.c.bf16 %v879_v63, %v5494_v4  ;;  %v4891_v4 = vld [vmem:[%s6513_s3 + $0x18] sm:$0xff]  }
 0x113   :  { %v884_v0 = vadd.f32 %v5454_v18, %v861_v25  ;;  %v859_v1 = vadd.f32 %v834_v27, %v670_v26  ;;  %v5636_v3 = vpack.c.bf16 %v881_v30, %v5514_v16  ;;  %v4899_v16 = vld [vmem:[%s6513_s3 + $0x28] sm:$0xff]  }
 0x115   :  { %v5545_v28 = vpack.c.bf16 %v884_v0, %v5532_v57  ;;  %v882_v34 = vadd.f32 %v5454_v18, %v859_v1  ;;  %v5633_v18 = vpack.c.bf16 %v879_v63, %v5523_v60  ;;  %v4904_v60 = vld [vmem:[%s6513_s3 + $0xe0] sm:$0xff]  }
 0x117   :  { %v5554_v40 = vpack.c.bf16 %v882_v34, %v881_v30  ;;  %v5647_v36 = vpack.c.bf16 %v5532_v57, %v882_v34 }
 0x119   :  { %4382 = vmatmul.mubr.msk.bf16.gmra.mxu0 %vm921_vm3, %v5552_v38  ;;  %4386 = vmatmul.mubr.msk.bf16.vlgmr.msra.gmra.mxu1 %vm921_vm3, %v5554_v40 }
 0x11a   :  { %4390 = vmatpush3.bf16.msra.mxu1 %v4883_v35  ;;  %4393 = vmatprep.mubr.msk.bf16.mxu1 %vm5028_vm2, %v5027_v2 }
 0x11b   :  { %4391 = vmatprep.subr.bf16.mxu1 %v5027_v2  ;;  %4417 = vmatprep.mubr.msk.bf16.mxu0 %vm5028_vm2, %v5027_v2 }
 0x11e   :  { %4392 = vmatpush3.bf16.msra.mxu1 %v4885_v7 }
 0x11f   :  { %4437 = vmatprep.subr.bf16.mxu1 %v5027_v2 }
 0x121   :  { %4394 = vmatmul.mubr.msk.bf16.vlgmr.msra.gmra.mxu1 %vm921_vm3, %v5578_v54  ;;  %4418 = vmatmul.mubr.msk.bf16.vlgmr.msra.gmra.mxu0 %vm921_vm3, %v5575_v46 }
 0x122   :  { %4438 = vmatpush3.bf16.msra.mxu1 %v4887_v44  ;;  %4397 = vmatprep.mubr.msk.bf16.mxu1 %vm5028_vm2, %v5027_v2 }
 0x123   :  { %4421 = vmatprep.mubr.msk.bf16.mxu0 %vm5028_vm2, %v5027_v2  ;;  %4439 = vmatprep.subr.bf16.mxu1 %v5027_v2 }
 0x124   :  { %4462 = vmatpush3.bf16.msra.mxu0 %v4889_v6 }
 0x125   :  { %4463 = vmatprep.subr.bf16.mxu0 %v5027_v2 }
 0x126   :  { %4440 = vmatpush3.bf16.msra.mxu1 %v4888_v51 }
 0x127   :  { %4485 = vmatprep.subr.bf16.mxu1 %v5027_v2 }
 0x128   :  { %4464 = vmatpush3.bf16.msra.mxu0 %v4890_v61  ;;  %v4907_v61 = vld [vmem:[%s6513_s3 + $0x38] sm:$0xff]  }
 0x129   :  { %4398 = vmatmul.mubr.msk.bf16.gmra.mxu1 %vm921_vm3, %v5575_v46  ;;  %4422 = vmatmul.mubr.msk.bf16.gmra.mxu0 %vm921_vm3, %v5605_v48 }
 0x12a   :  { %4401 = vmatprep.mubr.msk.bf16.mxu1 %vm5028_vm2, %v5027_v2  ;;  %4425 = vmatprep.mubr.msk.bf16.mxu0 %vm5028_vm2, %v5027_v2 }
 0x12b   :  { %4509 = vmatprep.subr.bf16.mxu0 %v5027_v2 }
 0x131   :  { %4402 = vmatmul.mubr.msk.bf16.gmra.mxu1 %vm921_vm3, %v5622_v62  ;;  %4426 = vmatmul.mubr.msk.bf16.gmra.mxu0 %vm921_vm3, %v5619_v53 }
 0x132   :  { %4405 = vmatprep.mubr.msk.bf16.mxu1 %vm5028_vm2, %v5027_v2  ;;  %4429 = vmatprep.mubr.msk.bf16.mxu0 %vm5028_vm2, %v5027_v2 }
 0x139   :  { %4406 = vmatmul.mubr.msk.bf16.gmra.mxu1 %vm921_vm3, %v5633_v18  ;;  %4430 = vmatmul.mubr.msk.bf16.gmra.mxu0 %vm921_vm3, %v5636_v3 }
 0x13a   :  { %4409 = vmatprep.mubr.msk.bf16.mxu1 %vm5028_vm2, %v5027_v2  ;;  %4433 = vmatprep.mubr.msk.bf16.mxu0 %vm5028_vm2, %v5027_v2 }
 0x141   :  { %4410 = vmatmul.mubr.msk.bf16.gmra.mxu1 %vm921_vm3, %v5636_v3  ;;  %4434 = vmatmul.mubr.msk.bf16.gmra.mxu0 %vm921_vm3, %v5647_v36 }
 0x142   :  { %4441 = vmatprep.mubr.msk.bf16.mxu1 %vm5028_vm2, %v5027_v2  ;;  %4465 = vmatprep.mubr.msk.bf16.mxu0 %vm5028_vm2, %v5027_v2 }
 0x149   :  { %4442 = vmatmul.mubr.msk.bf16.vlgmr.msra.gmra.mxu1 %vm921_vm3, %v5500_v13  ;;  %4466 = vmatmul.mubr.msk.bf16.vlgmr.msra.gmra.mxu0 %vm921_vm3, %v5467_v22 }
 0x14a   :  { %4486 = vmatpush3.bf16.msra.mxu1 %v4891_v4  ;;  %4445 = vmatprep.mubr.msk.bf16.mxu1 %vm5028_vm2, %v5027_v2  ;;  %v4909_v4 = vld [vmem:[%s6513_s3 + $0xb8] sm:$0xff]  }
 0x14b   :  { %4469 = vmatprep.mubr.msk.bf16.mxu0 %vm5028_vm2, %v5027_v2  ;;  %4487 = vmatprep.subr.bf16.mxu1 %v5027_v2 }
 0x14c   :  { %4510 = vmatpush3.bf16.msra.mxu0 %v4893_v49 }
 0x14d   :  { %4511 = vmatprep.subr.bf16.mxu0 %v5027_v2 }
 0x14e   :  { %4488 = vmatpush3.bf16.msra.mxu1 %v4892_v14 }
 0x14f   :  { %4533 = vmatprep.subr.bf16.mxu1 %v5027_v2 }
 0x150   :  { %4512 = vmatpush3.bf16.msra.mxu0 %v4894_v10 }
 0x151   :  { %4446 = vmatmul.mubr.msk.bf16.gmra.mxu1 %vm921_vm3, %v5505_v15  ;;  %4470 = vmatmul.mubr.msk.bf16.gmra.mxu0 %vm921_vm3, %v5500_v13 }
 0x152   :  { %4449 = vmatprep.mubr.msk.bf16.mxu1 %vm5028_vm2, %v5027_v2  ;;  %4473 = vmatprep.mubr.msk.bf16.mxu0 %vm5028_vm2, %v5027_v2 }
 0x153   :  { %4557 = vmatprep.subr.bf16.mxu0 %v5027_v2 }
 0x159   :  { %4450 = vmatmul.mubr.msk.bf16.gmra.mxu1 %vm921_vm3, %v5520_v56  ;;  %4474 = vmatmul.mubr.msk.bf16.gmra.mxu0 %vm921_vm3, %v5529_v55 }
 0x15a   :  { %4453 = vmatprep.mubr.msk.bf16.mxu1 %vm5028_vm2, %v5027_v2  ;;  %4477 = vmatprep.mubr.msk.bf16.mxu0 %vm5028_vm2, %v5027_v2 }
 0x161   :  { %4454 = vmatmul.mubr.msk.bf16.gmra.mxu1 %vm921_vm3, %v5554_v40  ;;  %4478 = vmatmul.mubr.msk.bf16.gmra.mxu0 %vm921_vm3, %v5552_v38 }
 0x162   :  { %4457 = vmatprep.mubr.msk.bf16.mxu1 %vm5028_vm2, %v5027_v2  ;;  %4481 = vmatprep.mubr.msk.bf16.mxu0 %vm5028_vm2, %v5027_v2 }
 0x169   :  { %4458 = vmatmul.mubr.msk.bf16.gmra.mxu1 %vm921_vm3, %v5545_v28  ;;  %4482 = vmatmul.mubr.msk.bf16.gmra.mxu0 %vm921_vm3, %v5554_v40 }
 0x16a   :  { %4489 = vmatprep.mubr.msk.bf16.mxu1 %vm5028_vm2, %v5027_v2  ;;  %4513 = vmatprep.mubr.msk.bf16.mxu0 %vm5028_vm2, %v5027_v2 }
 0x171   :  { %4490 = vmatmul.mubr.msk.bf16.vlgmr.msra.gmra.mxu1 %vm921_vm3, %v5578_v54  ;;  %4514 = vmatmul.mubr.msk.bf16.vlgmr.msra.gmra.mxu0 %vm921_vm3, %v5575_v46 }
 0x172   :  { %4534 = vmatpush3.bf16.msra.mxu1 %v4895_v12  ;;  %4493 = vmatprep.mubr.msk.bf16.mxu1 %vm5028_vm2, %v5027_v2  ;;  %v4908_v12 = vld [vmem:[%s6513_s3 + $0x30] sm:$0xff]  }
 0x173   :  { %4517 = vmatprep.mubr.msk.bf16.mxu0 %vm5028_vm2, %v5027_v2  ;;  %4535 = vmatprep.subr.bf16.mxu1 %v5027_v2 }
 0x174   :  { %4558 = vmatpush3.bf16.msra.mxu0 %v4897_v31 }
 0x175   :  { %4559 = vmatprep.subr.bf16.mxu0 %v5027_v2 }
 0x176   :  { %4536 = vmatpush3.bf16.msra.mxu1 %v4896_v50 }
 0x177   :  { %4581 = vmatprep.subr.bf16.mxu1 %v5027_v2 }
 0x178   :  { %4560 = vmatpush3.bf16.msra.mxu0 %v4898_v52 }
 0x179   :  { %4494 = vmatmul.mubr.msk.bf16.gmra.mxu1 %vm921_vm3, %v5575_v46  ;;  %4518 = vmatmul.mubr.msk.bf16.gmra.mxu0 %vm921_vm3, %v5605_v48 }
 0x17a   :  { %4497 = vmatprep.mubr.msk.bf16.mxu1 %vm5028_vm2, %v5027_v2  ;;  %4521 = vmatprep.mubr.msk.bf16.mxu0 %vm5028_vm2, %v5027_v2 }
 0x17b   :  { %4605 = vmatprep.subr.bf16.mxu0 %v5027_v2 }
 0x181   :  { %4498 = vmatmul.mubr.msk.bf16.gmra.mxu1 %vm921_vm3, %v5622_v62  ;;  %4522 = vmatmul.mubr.msk.bf16.gmra.mxu0 %vm921_vm3, %v5619_v53 }
 0x182   :  { %4501 = vmatprep.mubr.msk.bf16.mxu1 %vm5028_vm2, %v5027_v2  ;;  %4525 = vmatprep.mubr.msk.bf16.mxu0 %vm5028_vm2, %v5027_v2 }
 0x189   :  { %4502 = vmatmul.mubr.msk.bf16.gmra.mxu1 %vm921_vm3, %v5633_v18  ;;  %4526 = vmatmul.mubr.msk.bf16.gmra.mxu0 %vm921_vm3, %v5636_v3 }
 0x18a   :  { %4505 = vmatprep.mubr.msk.bf16.mxu1 %vm5028_vm2, %v5027_v2  ;;  %4529 = vmatprep.mubr.msk.bf16.mxu0 %vm5028_vm2, %v5027_v2 }
 0x191   :  { %4506 = vmatmul.mubr.msk.bf16.gmra.mxu1 %vm921_vm3, %v5636_v3  ;;  %4530 = vmatmul.mubr.msk.bf16.gmra.mxu0 %vm921_vm3, %v5647_v36 }
 0x192   :  { %4537 = vmatprep.mubr.msk.bf16.mxu1 %vm5028_vm2, %v5027_v2  ;;  %4561 = vmatprep.mubr.msk.bf16.mxu0 %vm5028_vm2, %v5027_v2 }
 0x199   :  { %4538 = vmatmul.mubr.msk.bf16.vlgmr.msra.gmra.mxu1 %vm921_vm3, %v5500_v13  ;;  %4562 = vmatmul.mubr.msk.bf16.vlgmr.msra.gmra.mxu0 %vm921_vm3, %v5467_v22 }
 0x19a   :  { %4582 = vmatpush3.bf16.msra.mxu1 %v4899_v16  ;;  %4541 = vmatprep.mubr.msk.bf16.mxu1 %vm5028_vm2, %v5027_v2 }
 0x19b   :  { %4565 = vmatprep.mubr.msk.bf16.mxu0 %vm5028_vm2, %v5027_v2  ;;  %4583 = vmatprep.subr.bf16.mxu1 %v5027_v2 }
 0x19c   :  { %4606 = vmatpush3.bf16.msra.mxu0 %v4901_v32 }
 0x19d   :  { %4607 = vmatprep.subr.bf16.mxu0 %v5027_v2 }
 0x19e   :  { %4584 = vmatpush3.bf16.msra.mxu1 %v4900_v33 }
 0x19f   :  { %4629 = vmatprep.subr.bf16.mxu1 %v5027_v2 }
 0x1a0   :  { %4608 = vmatpush3.bf16.msra.mxu0 %v4902_v37 }
 0x1a1   :  { %4542 = vmatmul.mubr.msk.bf16.gmra.mxu1 %vm921_vm3, %v5505_v15  ;;  %4566 = vmatmul.mubr.msk.bf16.gmra.mxu0 %vm921_vm3, %v5500_v13 }
 0x1a2   :  { %4545 = vmatprep.mubr.msk.bf16.mxu1 %vm5028_vm2, %v5027_v2  ;;  %4569 = vmatprep.mubr.msk.bf16.mxu0 %vm5028_vm2, %v5027_v2 }
 0x1a3   :  { %4653 = vmatprep.subr.bf16.mxu0 %v5027_v2 }
 0x1a9   :  { %4546 = vmatmul.mubr.msk.bf16.gmra.mxu1 %vm921_vm3, %v5520_v56  ;;  %4570 = vmatmul.mubr.msk.bf16.gmra.mxu0 %vm921_vm3, %v5529_v55 }
 0x1aa   :  { %4549 = vmatprep.mubr.msk.bf16.mxu1 %vm5028_vm2, %v5027_v2  ;;  %4573 = vmatprep.mubr.msk.bf16.mxu0 %vm5028_vm2, %v5027_v2 }
 0x1b1   :  { %4550 = vmatmul.mubr.msk.bf16.gmra.mxu1 %vm921_vm3, %v5554_v40  ;;  %4574 = vmatmul.mubr.msk.bf16.gmra.mxu0 %vm921_vm3, %v5552_v38 }
 0x1b2   :  { %4553 = vmatprep.mubr.msk.bf16.mxu1 %vm5028_vm2, %v5027_v2  ;;  %4577 = vmatprep.mubr.msk.bf16.mxu0 %vm5028_vm2, %v5027_v2 }
 0x1b9   :  { %4554 = vmatmul.mubr.msk.bf16.gmra.mxu1 %vm921_vm3, %v5545_v28  ;;  %4578 = vmatmul.mubr.msk.bf16.gmra.mxu0 %vm921_vm3, %v5554_v40 }
 0x1ba   :  { %4585 = vmatprep.mubr.msk.bf16.mxu1 %vm5028_vm2, %v5027_v2  ;;  %4609 = vmatprep.mubr.msk.bf16.mxu0 %vm5028_vm2, %v5027_v2 }
 0x1c1   :  { %v971_v45 = vpop.f32.mrf.mxu0  ;;  %4586 = vmatmul.mubr.msk.bf16.vlgmr.msra.gmra.mxu1 %vm921_vm3, %v5578_v54  ;;  %4610 = vmatmul.mubr.msk.bf16.vlgmr.msra.gmra.mxu0 %vm921_vm3, %v5575_v46 }
 0x1c2   :  { %4630 = vmatpush3.bf16.msra.mxu1 %v4903_v39  ;;  %4589 = vmatprep.mubr.msk.bf16.mxu1 %vm5028_vm2, %v5027_v2 }
 0x1c3   :  { %v4371_v5 = vpop.f32.mrf.mxu0  ;;  %4613 = vmatprep.mubr.msk.bf16.mxu0 %vm5028_vm2, %v5027_v2  ;;  %4631 = vmatprep.subr.bf16.mxu1 %v5027_v2 }
 0x1c4   :  { %4654 = vmatpush3.bf16.msra.mxu0 %v4905_v43 }
 0x1c5   :  { %v974_v42 = vpop.f32.mrf.mxu0  ;;  %4655 = vmatprep.subr.bf16.mxu0 %v5027_v2 }
 0x1c6   :  { %4632 = vmatpush3.bf16.msra.mxu1 %v4904_v60 }
 0x1c7   :  { %v4372_v11 = vpop.f32.mrf.mxu0  ;;  %4677 = vmatprep.subr.bf16.mxu1 %v5027_v2 }
 0x1c8   :  { %4656 = vmatpush3.bf16.msra.mxu0 %v4906_v41 }
 0x1c9   :  { %v978_v17 = vpop.f32.mrf.mxu0  ;;  %4590 = vmatmul.mubr.msk.bf16.gmra.mxu1 %vm921_vm3, %v5575_v46  ;;  %4614 = vmatmul.mubr.msk.bf16.gmra.mxu0 %vm921_vm3, %v5605_v48 }
 0x1ca   :  { %4593 = vmatprep.mubr.msk.bf16.mxu1 %vm5028_vm2, %v5027_v2  ;;  %4617 = vmatprep.mubr.msk.bf16.mxu0 %vm5028_vm2, %v5027_v2 }
 0x1cb   :  { %v4375_v57 = vpop.f32.mrf.mxu0  ;;  %4701 = vmatprep.subr.bf16.mxu0 %v5027_v2 }
 0x1cd   :  { %v981_v59 = vpop.f32.mrf.mxu0 }
 0x1cf   :  { %v4376_v19 = vpop.f32.mrf.mxu0 }
 0x1d1   :  { %v5857_v20 = vpop.f32.mrf.mxu0  ;;  %4594 = vmatmul.mubr.msk.bf16.gmra.mxu1 %vm921_vm3, %v5622_v62  ;;  %4618 = vmatmul.mubr.msk.bf16.gmra.mxu0 %vm921_vm3, %v5619_v53 }
 0x1d2   :  { %4597 = vmatprep.mubr.msk.bf16.mxu1 %vm5028_vm2, %v5027_v2  ;;  %4621 = vmatprep.mubr.msk.bf16.mxu0 %vm5028_vm2, %v5027_v2 }
 0x1d3   :  { %v4379_v23 = vpop.f32.mrf.mxu0 }
 0x1d5   :  { %v5867_v24 = vpop.f32.mrf.mxu0 }
 0x1d7   :  { %v4380_v25 = vpop.f32.mrf.mxu0 }
 0x1d9   :  { %v993_v26 = vpop.f32.mrf.mxu0  ;;  %v1000_v27 = vpop.f32.mrf.mxu1  ;;  %4598 = vmatmul.mubr.msk.bf16.gmra.mxu1 %vm921_vm3, %v5633_v18  ;;  %4622 = vmatmul.mubr.msk.bf16.gmra.mxu0 %vm921_vm3, %v5636_v3 }
 0x1da   :  { %4601 = vmatprep.mubr.msk.bf16.mxu1 %vm5028_vm2, %v5027_v2  ;;  %4625 = vmatprep.mubr.msk.bf16.mxu0 %vm5028_vm2, %v5027_v2 }
 0x1db   :  { %v4383_v0 = vpop.f32.mrf.mxu0  ;;  %v4387_v1 = vpop.f32.mrf.mxu1 }
 0x1dd   :  { %v5877_v29 = vpop.f32.mrf.mxu0  ;;  %v5879_v63 = vpop.f32.mrf.mxu1 }
 0x1df   :  { %v4384_v30 = vpop.f32.mrf.mxu0  ;;  %v4388_v34 = vpop.f32.mrf.mxu1 }
 0x1e1   :  { %v1067_v35 = vpop.f32.mrf.mxu1  ;;  %v1161_v21 = vpop.f32.mrf.mxu0  ;;  %4602 = vmatmul.mubr.msk.bf16.gmra.mxu1 %vm921_vm3, %v5636_v3  ;;  %4626 = vmatmul.mubr.msk.bf16.gmra.mxu0 %vm921_vm3, %v5647_v36 }
 0x1e2   :  { %v1068_v7 = vadd.f32 %v1067_v35, %v971_v45  ;;  %4633 = vmatprep.mubr.msk.bf16.mxu1 %vm5028_vm2, %v5027_v2  ;;  %4657 = vmatprep.mubr.msk.bf16.mxu0 %vm5028_vm2, %v5027_v2 }
 0x1e3   :  { %v4395_v9 = vpop.f32.mrf.mxu1  ;;  %v4419_v44 = vpop.f32.mrf.mxu0 }
 0x1e4   :  { %v5889_v6 = vadd.f32 %v1161_v21, %v1068_v7 }
 0x1e5   :  { %v1070_v51 = vpop.f32.mrf.mxu1  ;;  %v1164_v58 = vpop.f32.mrf.mxu0 }
 0x1e7   :  { %v4396_v8 = vpop.f32.mrf.mxu1  ;;  %v4420_v47 = vpop.f32.mrf.mxu0 }
 0x1e9   :  { %v1074_v49 = vpop.f32.mrf.mxu1  ;;  %v1168_v14 = vpop.f32.mrf.mxu0  ;;  %4634 = vmatmul.mubr.msk.bf16.vlgmr.msra.gmra.mxu1 %vm921_vm3, %v5500_v13  ;;  %4658 = vmatmul.mubr.msk.bf16.vlgmr.msra.gmra.mxu0 %vm921_vm3, %v5467_v22  ;;  %v4910_v22 = vld [vmem:[%s6513_s3 + $0xb0] sm:$0xff]  }
 0x1ea   :  { %v1075_v10 = vadd.f32 %v1074_v49, %v978_v17  ;;  %4678 = vmatpush3.bf16.msra.mxu1 %v4907_v61  ;;  %4637 = vmatprep.mubr.msk.bf16.mxu1 %vm5028_vm2, %v5027_v2 }
 0x1eb   :  { %v4399_v31 = vpop.f32.mrf.mxu1  ;;  %v4423_v50 = vpop.f32.mrf.mxu0  ;;  %4661 = vmatprep.mubr.msk.bf16.mxu0 %vm5028_vm2, %v5027_v2  ;;  %4679 = vmatprep.subr.bf16.mxu1 %v5027_v2 }
 0x1ec   :  { %v5909_v52 = vadd.f32 %v1168_v14, %v1075_v10  ;;  %4702 = vmatpush3.bf16.msra.mxu0 %v4909_v4  ;;  %v4911_v10 = vld [vmem:[%s6513_s3 + $0xf8] sm:$0xff]  }
 0x1ed   :  { %v1077_v16 = vpop.f32.mrf.mxu1  ;;  %v1171_v32 = vpop.f32.mrf.mxu0  ;;  %4703 = vmatprep.subr.bf16.mxu0 %v5027_v2 }
 0x1ee   :  { %4680 = vmatpush3.bf16.msra.mxu1 %v4908_v12  ;;  %v4912_v16 = vld [vmem:[%s6513_s3 + $0xf0] sm:$0xff]  }
 0x1ef   :  { %v4400_v33 = vpop.f32.mrf.mxu1  ;;  %v4424_v37 = vpop.f32.mrf.mxu0  ;;  %4725 = vmatprep.subr.bf16.mxu1 %v5027_v2 }
 0x1f0   :  { %4704 = vmatpush3.bf16.msra.mxu0 %v4910_v22 }
 0x1f1   :  { %v1081_v39 = vpop.f32.mrf.mxu1  ;;  %v1175_v43 = vpop.f32.mrf.mxu0  ;;  %4638 = vmatmul.mubr.msk.bf16.gmra.mxu1 %vm921_vm3, %v5505_v15  ;;  %4662 = vmatmul.mubr.msk.bf16.gmra.mxu0 %vm921_vm3, %v5500_v13 }
 0x1f2   :  { %v1082_v45 = vadd.f32 %v1081_v39, %v5857_v20  ;;  %4641 = vmatprep.mubr.msk.bf16.mxu1 %vm5028_vm2, %v5027_v2  ;;  %4665 = vmatprep.mubr.msk.bf16.mxu0 %vm5028_vm2, %v5027_v2 }
 0x1f3   :  { %v4403_v60 = vpop.f32.mrf.mxu1  ;;  %v4427_v5 = vpop.f32.mrf.mxu0  ;;  %4749 = vmatprep.subr.bf16.mxu0 %v5027_v2 }
 0x1f4   :  { %v5926_v41 = vadd.f32 %v1175_v43, %v1082_v45 }
 0x1f5   :  { %v1084_v42 = vpop.f32.mrf.mxu1  ;;  %v1178_v11 = vpop.f32.mrf.mxu0 }
 0x1f6   :  { %v1085_v17 = vadd.f32 %v1084_v42, %v5867_v24 }
 0x1f7   :  { %v4404_v57 = vpop.f32.mrf.mxu1  ;;  %v4428_v59 = vpop.f32.mrf.mxu0 }
 0x1f8   :  { %v5929_v19 = vadd.f32 %v1178_v11, %v1085_v17 }
 0x1f9   :  { %v1089_v20 = vpop.f32.mrf.mxu1  ;;  %v1183_v23 = vpop.f32.mrf.mxu0  ;;  %4642 = vmatmul.mubr.msk.bf16.gmra.mxu1 %vm921_vm3, %v5520_v56  ;;  %4666 = vmatmul.mubr.msk.bf16.gmra.mxu0 %vm921_vm3, %v5529_v55 }
 0x1fa   :  { %4645 = vmatprep.mubr.msk.bf16.mxu1 %vm5028_vm2, %v5027_v2  ;;  %4669 = vmatprep.mubr.msk.bf16.mxu0 %vm5028_vm2, %v5027_v2 }
 0x1fb   :  { %v4407_v25 = vpop.f32.mrf.mxu1  ;;  %v4431_v24 = vpop.f32.mrf.mxu0 }
 0x1fd   :  { %v1091_v26 = vpop.f32.mrf.mxu1  ;;  %v1185_v27 = vpop.f32.mrf.mxu0 }
 0x1fe   :  { %v1092_v0 = vadd.f32 %v1091_v26, %v5877_v29 }
 0x1ff   :  { %v4408_v1 = vpop.f32.mrf.mxu1  ;;  %v4432_v30 = vpop.f32.mrf.mxu0 }
 0x200   :  { %v5940_v34 = vadd.f32 %v1185_v27, %v1092_v0 }
 0x201   :  { %v1096_v35 = vpop.f32.mrf.mxu1  ;;  %v1190_v21 = vpop.f32.mrf.mxu0  ;;  %4646 = vmatmul.mubr.msk.bf16.gmra.mxu1 %vm921_vm3, %v5554_v40  ;;  %4670 = vmatmul.mubr.msk.bf16.gmra.mxu0 %vm921_vm3, %v5552_v38 }
 0x202   :  { %4649 = vmatprep.mubr.msk.bf16.mxu1 %vm5028_vm2, %v5027_v2  ;;  %4673 = vmatprep.mubr.msk.bf16.mxu0 %vm5028_vm2, %v5027_v2 }
 0x203   :  { %v4411_v55 = vpop.f32.mrf.mxu1  ;;  %v4435_v29 = vpop.f32.mrf.mxu0 }
 0x205   :  { %v1098_v7 = vpop.f32.mrf.mxu1  ;;  %v1192_v9 = vpop.f32.mrf.mxu0 }
 0x206   :  { %v1099_v44 = vadd.f32 %v1098_v7, %v5879_v63 }
 0x207   :  { %v4412_v51 = vpop.f32.mrf.mxu1  ;;  %v4436_v58 = vpop.f32.mrf.mxu0 }
 0x208   :  { %v5951_v61 = vadd.f32 %v1192_v9, %v1099_v44 }
 0x209   :  { %v1261_v8 = vpop.f32.mrf.mxu1  ;;  %v5953_v47 = vpop.f32.mrf.mxu0  ;;  %4650 = vmatmul.mubr.msk.bf16.gmra.mxu1 %vm921_vm3, %v5545_v28  ;;  %4674 = vmatmul.mubr.msk.bf16.gmra.mxu0 %vm921_vm3, %v5554_v40 }
 0x20a   :  { %v5960_v38 = vadd.f32 %v1261_v8, %v5889_v6  ;;  %4681 = vmatprep.mubr.msk.bf16.mxu1 %vm5028_vm2, %v5027_v2  ;;  %4705 = vmatprep.mubr.msk.bf16.mxu0 %vm5028_vm2, %v5027_v2 }
 0x20b   :  { %v4443_v63 = vpop.f32.mrf.mxu1  ;;  %v4467_v4 = vpop.f32.mrf.mxu0 }
 0x20d   :  { %v1264_v49 = vpop.f32.mrf.mxu1  ;;  %v1365_v14 = vpop.f32.mrf.mxu0 }
 0x20f   :  { %v4444_v12 = vpop.f32.mrf.mxu1  ;;  %v4468_v31 = vpop.f32.mrf.mxu0 }
 0x211   :  { %v1268_v50 = vpop.f32.mrf.mxu1  ;;  %v5969_v22 = vpop.f32.mrf.mxu0  ;;  %4682 = vmatmul.mubr.msk.bf16.vlgmr.msra.gmra.mxu1 %vm921_vm3, %v5578_v54  ;;  %4706 = vmatmul.mubr.msk.bf16.vlgmr.msra.gmra.mxu0 %vm921_vm3, %v5575_v46 }
 0x212   :  { %v5976_v6 = vadd.f32 %v1268_v50, %v5909_v52  ;;  %4726 = vmatpush3.bf16.msra.mxu1 %v4911_v10  ;;  %4685 = vmatprep.mubr.msk.bf16.mxu1 %vm5028_vm2, %v5027_v2 }
 0x213   :  { %v4447_v32 = vpop.f32.mrf.mxu1  ;;  %v4471_v33 = vpop.f32.mrf.mxu0  ;;  %4709 = vmatprep.mubr.msk.bf16.mxu0 %vm5028_vm2, %v5027_v2  ;;  %4727 = vmatprep.subr.bf16.mxu1 %v5027_v2 }
 0x215   :  { %v1271_v54 = vpop.f32.mrf.mxu1  ;;  %v1372_v37 = vpop.f32.mrf.mxu0 }
 0x216   :  { %4728 = vmatpush3.bf16.msra.mxu1 %v4912_v16 }
 0x217   :  { %v4448_v52 = vpop.f32.mrf.mxu1  ;;  %v4472_v39 = vpop.f32.mrf.mxu0  ;;  %4761 = vmatprep.subr.bf16.mxu1 %v5027_v2 }
 0x219   :  { %v1275_v43 = vpop.f32.mrf.mxu1  ;;  %v5987_v45 = vpop.f32.mrf.mxu0  ;;  %4686 = vmatmul.mubr.msk.bf16.gmra.mxu1 %vm921_vm3, %v5575_v46  ;;  %4710 = vmatmul.mubr.msk.bf16.gmra.mxu0 %vm921_vm3, %v5605_v48 }
 0x21a   :  { %v5994_v60 = vadd.f32 %v1275_v43, %v5926_v41  ;;  %4689 = vmatprep.mubr.msk.bf16.mxu1 %vm5028_vm2, %v5027_v2  ;;  %4713 = vmatprep.mubr.msk.bf16.mxu0 %vm5028_vm2, %v5027_v2 }
 0x21b   :  { %v4451_v5 = vpop.f32.mrf.mxu1  ;;  %v4475_v42 = vpop.f32.mrf.mxu0 }
 0x21d   :  { %v1278_v11 = vpop.f32.mrf.mxu1  ;;  %v6000_v17 = vpop.f32.mrf.mxu0 }
 0x21e   :  { %v6003_v57 = vadd.f32 %v1278_v11, %v5929_v19 }
 0x21f   :  { %v4452_v46 = vpop.f32.mrf.mxu1  ;;  %v4476_v59 = vpop.f32.mrf.mxu0 }
 0x221   :  { %v1283_v48 = vpop.f32.mrf.mxu1  ;;  %v1384_v20 = vpop.f32.mrf.mxu0  ;;  %4690 = vmatmul.mubr.msk.bf16.gmra.mxu1 %vm921_vm3, %v5622_v62  ;;  %4714 = vmatmul.mubr.msk.bf16.gmra.mxu0 %vm921_vm3, %v5619_v53 }
 0x222   :  { %4693 = vmatprep.mubr.msk.bf16.mxu1 %vm5028_vm2, %v5027_v2  ;;  %4717 = vmatprep.mubr.msk.bf16.mxu0 %vm5028_vm2, %v5027_v2 }
 0x223   :  { %v4455_v41 = vpop.f32.mrf.mxu1  ;;  %v4479_v23 = vpop.f32.mrf.mxu0 }
 0x225   :  { %v1285_v19 = vpop.f32.mrf.mxu1  ;;  %v6013_v25 = vpop.f32.mrf.mxu0 }
 0x226   :  { %v6016_v24 = vadd.f32 %v1285_v19, %v5940_v34 }
 0x227   :  { %v4456_v26 = vpop.f32.mrf.mxu1  ;;  %v4480_v27 = vpop.f32.mrf.mxu0 }
 0x229   :  { %v1290_v62 = vpop.f32.mrf.mxu1  ;;  %v1391_v0 = vpop.f32.mrf.mxu0  ;;  %4694 = vmatmul.mubr.msk.bf16.gmra.mxu1 %vm921_vm3, %v5633_v18  ;;  %4718 = vmatmul.mubr.msk.bf16.gmra.mxu0 %vm921_vm3, %v5636_v3 }
 0x22a   :  { %4697 = vmatprep.mubr.msk.bf16.mxu1 %vm5028_vm2, %v5027_v2  ;;  %4721 = vmatprep.mubr.msk.bf16.mxu0 %vm5028_vm2, %v5027_v2 }
 0x22b   :  { %v4459_v53 = vpop.f32.mrf.mxu1  ;;  %v4483_v1 = vpop.f32.mrf.mxu0 }
 0x22d   :  { %v1292_v30 = vpop.f32.mrf.mxu1  ;;  %v6026_v34 = vpop.f32.mrf.mxu0 }
 0x22e   :  { %v6029_v35 = vadd.f32 %v1292_v30, %v5951_v61 }
 0x22f   :  { %v4460_v21 = vpop.f32.mrf.mxu1  ;;  %v4484_v55 = vpop.f32.mrf.mxu0 }
 0x231   :  { %v1443_v18 = vpop.f32.mrf.mxu1  ;;  %v1528_v29 = vpop.f32.mrf.mxu0  ;;  %4698 = vmatmul.mubr.msk.bf16.gmra.mxu1 %vm921_vm3, %v5636_v3  ;;  %4722 = vmatmul.mubr.msk.bf16.gmra.mxu0 %vm921_vm3, %v5647_v36 }
 0x232   :  { %v1444_v7 = vadd.f32 %v1443_v18, %v5953_v47  ;;  %4729 = vmatprep.mubr.msk.bf16.mxu1 %vm5028_vm2, %v5027_v2  ;;  %4757 = vmatprep.mubr.msk.bf16.mxu0 %vm5028_vm2, %v5027_v2 }
 0x233   :  { %v4491_v9 = vpop.f32.mrf.mxu1  ;;  %v4515_v44 = vpop.f32.mrf.mxu0 }
 0x234   :  { %v1563_v51 = vadd.f32 %v1528_v29, %v1444_v7 }
 0x235   :  { %v1446_v58 = vpop.f32.mrf.mxu1  ;;  %v1531_v61 = vpop.f32.mrf.mxu0 }
 0x237   :  { %v4492_v8 = vpop.f32.mrf.mxu1  ;;  %v4516_v63 = vpop.f32.mrf.mxu0 }
 0x239   :  { %v1450_v4 = vpop.f32.mrf.mxu1  ;;  %v1535_v3 = vpop.f32.mrf.mxu0  ;;  %4730 = vmatmul.mubr.msk.bf16.vlgmr.msra.gmra.mxu1 %vm921_vm3, %v5500_v13 }
 0x23a   :  { %v1451_v36 = vadd.f32 %v1450_v4, %v5969_v22  ;;  %4733 = vmatprep.mubr.msk.bf16.mxu1 %vm5028_vm2, %v5027_v2 }
 0x23b   :  { %v4495_v47 = vpop.f32.mrf.mxu1  ;;  %v4519_v49 = vpop.f32.mrf.mxu0 }
 0x23c   :  { %v1564_v14 = vadd.f32 %v1535_v3, %v1451_v36 }
 0x23d   :  { %v1453_v10 = vpop.f32.mrf.mxu1  ;;  %v1538_v12 = vpop.f32.mrf.mxu0 }
 0x23f   :  { %v4496_v31 = vpop.f32.mrf.mxu1  ;;  %v4520_v50 = vpop.f32.mrf.mxu0 }
 0x241   :  { %v1457_v16 = vpop.f32.mrf.mxu1  ;;  %v1542_v32 = vpop.f32.mrf.mxu0  ;;  %4734 = vmatmul.mubr.msk.bf16.gmra.mxu1 %vm921_vm3, %v5505_v15 }
 0x242   :  { %v1458_v33 = vadd.f32 %v1457_v16, %v5987_v45  ;;  %4737 = vmatprep.mubr.msk.bf16.mxu1 %vm5028_vm2, %v5027_v2 }
 0x243   :  { %v4499_v13 = vpop.f32.mrf.mxu1  ;;  %v4523_v22 = vpop.f32.mrf.mxu0 }
 0x244   :  { %v1565_v54 = vadd.f32 %v1542_v32, %v1458_v33 }
 0x245   :  { %v1460_v37 = vpop.f32.mrf.mxu1  ;;  %v1545_v52 = vpop.f32.mrf.mxu0 }
 0x246   :  { %v1461_v39 = vadd.f32 %v1460_v37, %v6000_v17 }
 0x247   :  { %v4500_v43 = vpop.f32.mrf.mxu1  ;;  %v4524_v5 = vpop.f32.mrf.mxu0 }
 0x248   :  { %v1566_v42 = vadd.f32 %v1545_v52, %v1461_v39 }
 0x249   :  { %v1465_v11 = vpop.f32.mrf.mxu1  ;;  %v1550_v46 = vpop.f32.mrf.mxu0  ;;  %4738 = vmatmul.mubr.msk.bf16.gmra.mxu1 %vm921_vm3, %v5520_v56 }
 0x24a   :  { %4741 = vmatprep.mubr.msk.bf16.mxu1 %vm5028_vm2, %v5027_v2 }
 0x24b   :  { %v4503_v15 = vpop.f32.mrf.mxu1  ;;  %v4527_v45 = vpop.f32.mrf.mxu0 }
 0x24d   :  { %v1467_v59 = vpop.f32.mrf.mxu1  ;;  %v1552_v48 = vpop.f32.mrf.mxu0 }
 0x24e   :  { %v1468_v20 = vadd.f32 %v1467_v59, %v6013_v25 }
 0x24f   :  { %v4504_v41 = vpop.f32.mrf.mxu1  ;;  %v4528_v23 = vpop.f32.mrf.mxu0 }
 0x250   :  { %v1567_v17 = vadd.f32 %v1552_v48, %v1468_v20 }
 0x251   :  { %v1472_v19 = vpop.f32.mrf.mxu1  ;;  %v1557_v26 = vpop.f32.mrf.mxu0  ;;  %4742 = vmatmul.mubr.msk.bf16.gmra.mxu1 %vm921_vm3, %v5554_v40 }
 0x252   :  { %4745 = vmatprep.mubr.msk.bf16.mxu1 %vm5028_vm2, %v5027_v2 }
 0x253   :  { %v4507_v56 = vpop.f32.mrf.mxu1  ;;  %v4531_v27 = vpop.f32.mrf.mxu0 }
 0x255   :  { %v1474_v62 = vpop.f32.mrf.mxu1  ;;  %v1559_v0 = vpop.f32.mrf.mxu0 }
 0x256   :  { %v1475_v53 = vadd.f32 %v1474_v62, %v6026_v34 }
 0x257   :  { %v4508_v1 = vpop.f32.mrf.mxu1  ;;  %v4532_v30 = vpop.f32.mrf.mxu0 }
 0x258   :  { %v1568_v25 = vadd.f32 %v1559_v0, %v1475_v53 }
 0x259   :  { %v1619_v21 = vpop.f32.mrf.mxu1  ;;  %v6061_v55 = vpop.f32.mrf.mxu0  ;;  %4746 = vmatmul.mubr.msk.bf16.gmra.mxu1 %vm921_vm3, %v5545_v28 }
 0x25a   :  { %v1654_v18 = vadd.f32 %v1619_v21, %v1563_v51  ;;  %4769 = vmatprep.mubr.msk.bf16.mxu1 %vm5028_vm2, %v5027_v2 }
 0x25b   :  { %v4539_v40 = vpop.f32.mrf.mxu1  ;;  %v4563_v29 = vpop.f32.mrf.mxu0 }
 0x25c   :  { %v1666_v7 = vrot.slane %v1654_v18, 1 }
 0x25d   :  { %v1622_v9 = vpop.f32.mrf.mxu1  ;;  %v1741_v44 = vpop.f32.mrf.mxu0 }
 0x25e   :  { %v6068_v34 = vadd.f32 %v1666_v7, %v5960_v38 }
 0x25f   :  { %v4540_v58 = vpop.f32.mrf.mxu1  ;;  %v4564_v61 = vpop.f32.mrf.mxu0 }
 0x261   :  { %v1626_v8 = vpop.f32.mrf.mxu1  ;;  %v1745_v63 = vpop.f32.mrf.mxu0 }
 0x262   :  { %v1655_v4 = vadd.f32 %v1626_v8, %v1564_v14 }
 0x263   :  { %v4543_v3 = vpop.f32.mrf.mxu1  ;;  %v4567_v36 = vpop.f32.mrf.mxu0 }
 0x264   :  { %v1667_v28 = vrot.slane %v1655_v4, 1 }
 0x265   :  { %v1629_v51 = vpop.f32.mrf.mxu1  ;;  %v1748_v47 = vpop.f32.mrf.mxu0 }
 0x266   :  { %v6071_v49 = vadd.f32 %v1667_v28, %v5976_v6  ;;  %v4915_v51 = vld [vmem:[%s6515_s5 + $0x18] sm:$0xff]  }
 0x267   :  { %v4544_v10 = vpop.f32.mrf.mxu1  ;;  %v4568_v12 = vpop.f32.mrf.mxu0  ;;  %4762 = vmatpush3.bf16.msra.mxu1 %v4915_v51 }
 0x268   :  { %4763 = vmatprep.subr.bf16.mxu1 %v5027_v2 }
 0x269   :  { %v1633_v31 = vpop.f32.mrf.mxu1  ;;  %v6073_v50 = vpop.f32.mrf.mxu0 }
 0x26a   :  { %v1656_v38 = vadd.f32 %v1633_v31, %v1565_v54 }
 0x26b   :  { %v4547_v16 = vpop.f32.mrf.mxu1  ;;  %v4571_v32 = vpop.f32.mrf.mxu0 }
 0x26c   :  { %v1668_v33 = vrot.slane %v1656_v38, 1  ;;  %v4917_v38 = vld [vmem:[%s6515_s5 + $0x10] sm:$0xff]  }
 0x26d   :  { %v1636_v13 = vpop.f32.mrf.mxu1  ;;  %v6075_v22 = vpop.f32.mrf.mxu0  ;;  %4764 = vmatpush3.bf16.msra.mxu1 %v4917_v38 }
 0x26e   :  { %v6078_v14 = vadd.f32 %v1668_v33, %v5994_v60  ;;  %v1657_v37 = vadd.f32 %v1636_v13, %v1566_v42  ;;  %v4913_v60 = vld [vmem:[%s6515_s5 + $0x38] sm:$0xff]   ;;  %4765 = vmatprep.subr.bf16.mxu1 %v5027_v2 }
 0x26f   :  { %v4548_v52 = vpop.f32.mrf.mxu1  ;;  %v4572_v39 = vpop.f32.mrf.mxu0  ;;  %4750 = vmatpush3.bf16.msra.mxu0 %v4913_v60 }
 0x270   :  { %v1669_v6 = vrot.slane %v1657_v37, 1  ;;  %4751 = vmatprep.subr.bf16.mxu0 %v5027_v2  ;;  %v4916_v39 = vld [vmem:[%s6515_s5 + $0x28] sm:$0xff]  }
 0x271   :  { %v1641_v43 = vpop.f32.mrf.mxu1  ;;  %v1760_v5 = vpop.f32.mrf.mxu0 }
 0x272   :  { %v6081_v11 = vadd.f32 %v1669_v6, %v6003_v57 }
 0x273   :  { %v4551_v46 = vpop.f32.mrf.mxu1  ;;  %v4575_v54 = vpop.f32.mrf.mxu0 }
 0x275   :  { %v1643_v15 = vpop.f32.mrf.mxu1  ;;  %v6083_v45 = vpop.f32.mrf.mxu0 }
 0x276   :  { %v1658_v59 = vadd.f32 %v1643_v15, %v1567_v17  ;;  %v4920_v15 = vld [vmem:[%s6515_s5] sm:$0xff]  }
 0x277   :  { %v4552_v48 = vpop.f32.mrf.mxu1  ;;  %v4576_v20 = vpop.f32.mrf.mxu0 }
 0x278   :  { %v1670_v41 = vrot.slane %v1658_v59, 1 }
 0x279   :  { %v1648_v42 = vpop.f32.mrf.mxu1  ;;  %v1767_v23 = vpop.f32.mrf.mxu0 }
 0x27a   :  { %v6089_v19 = vadd.f32 %v1670_v41, %v6016_v24 }
 0x27b   :  { %v4555_v57 = vpop.f32.mrf.mxu1  ;;  %v4579_v26 = vpop.f32.mrf.mxu0 }
 0x27d   :  { %v1650_v56 = vpop.f32.mrf.mxu1  ;;  %v6092_v27 = vpop.f32.mrf.mxu0 }
 0x27e   :  { %v1659_v17 = vadd.f32 %v1650_v56, %v1568_v25 }
 0x27f   :  { %v4556_v62 = vpop.f32.mrf.mxu1  ;;  %v4580_v0 = vpop.f32.mrf.mxu0 }
 0x280   :  { %v1671_v53 = vrot.slane %v1659_v17, 1 }
 0x281   :  { %v1819_v1 = vpop.f32.mrf.mxu1  ;;  %v1904_v30 = vpop.f32.mrf.mxu0 }
 0x282   :  { %v6095_v21 = vadd.f32 %v1671_v53, %v6029_v35  ;;  %v1820_v24 = vadd.f32 %v1819_v1, %v6061_v55  ;;  %v4914_v55 = vld [vmem:[%s6515_s5 + $0x30] sm:$0xff]  }
 0x283   :  { %v4587_v18 = vpop.f32.mrf.mxu1  ;;  %v4611_v40 = vpop.f32.mrf.mxu0  ;;  %4752 = vmatpush3.bf16.msra.mxu0 %v4914_v55 }
 0x284   :  { %v6098_v29 = vadd.f32 %v1904_v30, %v1820_v24  ;;  %4753 = vmatprep.subr.bf16.mxu0 %v5027_v2 }
 0x285   :  { %v1822_v7 = vpop.f32.mrf.mxu1  ;;  %v1907_v9 = vpop.f32.mrf.mxu0 }
 0x287   :  { %v4588_v44 = vpop.f32.mrf.mxu1  ;;  %v4612_v58 = vpop.f32.mrf.mxu0  ;;  %4754 = vmatpush3.bf16.msra.mxu0 %v4916_v39 }
 0x288   :  { %4755 = vmatprep.subr.bf16.mxu0 %v5027_v2 }
 0x289   :  { %v1826_v61 = vpop.f32.mrf.mxu1  ;;  %v1911_v25 = vpop.f32.mrf.mxu0 }
 0x28a   :  { %v1827_v8 = vadd.f32 %v1826_v61, %v1745_v63 }
 0x28b   :  { %v4591_v4 = vpop.f32.mrf.mxu1  ;;  %v4615_v3 = vpop.f32.mrf.mxu0 }
 0x28c   :  { %v6100_v36 = vadd.f32 %v1911_v25, %v1827_v8 }
 0x28d   :  { %v1829_v28 = vpop.f32.mrf.mxu1  ;;  %v1914_v35 = vpop.f32.mrf.mxu0 }
 0x28f   :  { %v4592_v47 = vpop.f32.mrf.mxu1  ;;  %v4616_v10 = vpop.f32.mrf.mxu0 }
 0x291   :  { %v1833_v12 = vpop.f32.mrf.mxu1  ;;  %v1918_v63 = vpop.f32.mrf.mxu0 }
 0x292   :  { %v1834_v31 = vadd.f32 %v1833_v12, %v6073_v50  ;;  %v4919_v50 = vld [vmem:[%s6515_s5 + $0x8] sm:$0xff]  }
 0x293   :  { %v4595_v16 = vpop.f32.mrf.mxu1  ;;  %v4619_v32 = vpop.f32.mrf.mxu0  ;;  %4766 = vmatpush3.bf16.msra.mxu1 %v4919_v50 }
 0x294   :  { %v6114_v33 = vadd.f32 %v1918_v63, %v1834_v31  ;;  %4767 = vmatprep.subr.bf16.mxu1 %v5027_v2 }
 0x295   :  { %v1836_v13 = vpop.f32.mrf.mxu1  ;;  %v1921_v37 = vpop.f32.mrf.mxu0 }
 0x296   :  { %v1837_v52 = vadd.f32 %v1836_v13, %v6075_v22  ;;  %v4918_v22 = vld [vmem:[%s6515_s5 + $0x20] sm:$0xff]  }
 0x297   :  { %v4596_v6 = vpop.f32.mrf.mxu1  ;;  %v4620_v43 = vpop.f32.mrf.mxu0  ;;  %4756 = vmatpush3.bf16.msra.mxu0 %v4918_v22  ;;  %4768 = vmatpush3.bf16.msra.mxu1 %v4920_v15 }
 0x298   :  { %v1942_v5 = vadd.f32 %v1921_v37, %v1837_v52  ;;  %4773 = vmatprep.subr.bf16.mxu0 %v5027_v2  ;;  %4785 = vmatprep.subr.bf16.mxu1 %v5027_v2 }
 0x299   :  { %v1841_v46 = vpop.f32.mrf.mxu1  ;;  %v1926_v54 = vpop.f32.mrf.mxu0 }
 0x29b   :  { %v4599_v59 = vpop.f32.mrf.mxu1  ;;  %v4623_v48 = vpop.f32.mrf.mxu0 }
 0x29d   :  { %v1843_v20 = vpop.f32.mrf.mxu1  ;;  %v1928_v41 = vpop.f32.mrf.mxu0 }
 0x29e   :  { %v1844_v60 = vadd.f32 %v1843_v20, %v6083_v45 }
 0x29f   :  { %v4600_v42 = vpop.f32.mrf.mxu1  ;;  %v4624_v23 = vpop.f32.mrf.mxu0 }
 0x2a0   :  { %v1943_v57 = vadd.f32 %v1928_v41, %v1844_v60 }
 0x2a1   :  { %v1848_v26 = vpop.f32.mrf.mxu1  ;;  %v1933_v56 = vpop.f32.mrf.mxu0 }
 0x2a3   :  { %v4603_v17 = vpop.f32.mrf.mxu1  ;;  %v4627_v62 = vpop.f32.mrf.mxu0 }
 0x2a5   :  { %v1850_v0 = vpop.f32.mrf.mxu1  ;;  %v1935_v53 = vpop.f32.mrf.mxu0 }
 0x2a6   :  { %v1851_v1 = vadd.f32 %v1850_v0, %v6092_v27 }
 0x2a7   :  { %v4604_v30 = vpop.f32.mrf.mxu1  ;;  %v4628_v24 = vpop.f32.mrf.mxu0 }
 0x2a8   :  { %v1944_v18 = vadd.f32 %v1935_v53, %v1851_v1 }
 0x2a9   :  { %v1995_v40 = vpop.f32.mrf.mxu1  ;;  %v6136_v7 = vpop.f32.mrf.mxu0 }
 0x2aa   :  { %v2030_v9 = vadd.f32 %v1995_v40, %v6098_v29 }
 0x2ab   :  { %v4635_v45 = vpop.f32.mrf.mxu1  ;;  %v4659_v44 = vpop.f32.mrf.mxu0 }
 0x2ac   :  { %v2042_v58 = vrot.slane %v2030_v9, 2 }
 0x2ad   :  { %v1998_v61 = vpop.f32.mrf.mxu1  ;;  %v2117_v25 = vpop.f32.mrf.mxu0 }
 0x2ae   :  { %v6140_v8 = vadd.f32 %v2042_v58, %v6068_v34 }
 0x2af   :  { %v4636_v4 = vpop.f32.mrf.mxu1  ;;  %v4660_v3 = vpop.f32.mrf.mxu0 }
 0x2b1   :  { %v2002_v28 = vpop.f32.mrf.mxu1  ;;  %v2121_v27 = vpop.f32.mrf.mxu0 }
 0x2b2   :  { %v2031_v35 = vadd.f32 %v2002_v28, %v6100_v36 }
 0x2b3   :  { %v4639_v55 = vpop.f32.mrf.mxu1  ;;  %v4663_v51 = vpop.f32.mrf.mxu0 }
 0x2b4   :  { %v2043_v47 = vrot.slane %v2031_v35, 2 }
 0x2b5   :  { %v2005_v10 = vpop.f32.mrf.mxu1  ;;  %v2124_v12 = vpop.f32.mrf.mxu0 }
 0x2b6   :  { %v6144_v29 = vadd.f32 %v2043_v47, %v6071_v49 }
 0x2b7   :  { %v4640_v63 = vpop.f32.mrf.mxu1  ;;  %v4664_v31 = vpop.f32.mrf.mxu0 }
 0x2b9   :  { %v2009_v38 = vpop.f32.mrf.mxu1  ;;  %v2128_v16 = vpop.f32.mrf.mxu0 }
 0x2ba   :  { %v2032_v34 = vadd.f32 %v2009_v38, %v6114_v33 }
 0x2bb   :  { %v4643_v32 = vpop.f32.mrf.mxu1  ;;  %v4667_v13 = vpop.f32.mrf.mxu0 }
 0x2bc   :  { %v2044_v37 = vrot.slane %v2032_v34, 2 }
 0x2bd   :  { %v2012_v52 = vpop.f32.mrf.mxu1  ;;  %v6147_v39 = vpop.f32.mrf.mxu0 }
 0x2be   :  { %v6150_v36 = vadd.f32 %v2044_v37, %v6078_v14  ;;  %v2033_v50 = vadd.f32 %v2012_v52, %v1942_v5 }
 0x2bf   :  { %v4644_v6 = vpop.f32.mrf.mxu1  ;;  %v4668_v43 = vpop.f32.mrf.mxu0 }
 0x2c0   :  { %v2045_v49 = vrot.slane %v2033_v50, 2 }
 0x2c1   :  { %v2017_v46 = vpop.f32.mrf.mxu1  ;;  %v2136_v54 = vpop.f32.mrf.mxu0 }
 0x2c2   :  { %v6153_v22 = vadd.f32 %v2045_v49, %v6081_v11 }
 0x2c3   :  { %v4647_v15 = vpop.f32.mrf.mxu1  ;;  %v4671_v33 = vpop.f32.mrf.mxu0 }
 0x2c5   :  { %v2019_v59 = vpop.f32.mrf.mxu1  ;;  %v6155_v48 = vpop.f32.mrf.mxu0 }
 0x2c6   :  { %v2034_v20 = vadd.f32 %v2019_v59, %v1943_v57 }
 0x2c7   :  { %v4648_v41 = vpop.f32.mrf.mxu1  ;;  %v4672_v60 = vpop.f32.mrf.mxu0 }
 0x2c8   :  { %v2046_v42 = vrot.slane %v2034_v20, 2 }
 0x2c9   :  { %v2024_v14 = vpop.f32.mrf.mxu1  ;;  %v2143_v23 = vpop.f32.mrf.mxu0 }
 0x2ca   :  { %v6158_v5 = vadd.f32 %v2046_v42, %v6089_v19 }
 0x2cb   :  { %v4651_v26 = vpop.f32.mrf.mxu1  ;;  %v4675_v56 = vpop.f32.mrf.mxu0 }
 0x2cd   :  { %v2026_v17 = vpop.f32.mrf.mxu1  ;;  %v2145_v62 = vpop.f32.mrf.mxu0 }
 0x2ce   :  { %v2035_v11 = vadd.f32 %v2026_v17, %v1944_v18 }
 0x2cf   :  { %v4652_v0 = vpop.f32.mrf.mxu1  ;;  %v4676_v53 = vpop.f32.mrf.mxu0 }
 0x2d0   :  { %v2047_v1 = vrot.slane %v2035_v11, 2 }
 0x2d1   :  { %v2195_v30 = vpop.f32.mrf.mxu1  ;;  %v2280_v24 = vpop.f32.mrf.mxu0 }
 0x2d2   :  { %v6161_v57 = vadd.f32 %v2047_v1, %v6095_v21 }
 0x2d3   :  { %v4683_v40 = vpop.f32.mrf.mxu1  ;;  %v4707_v9 = vpop.f32.mrf.mxu0 }
 0x2d5   :  { %v2198_v45 = vpop.f32.mrf.mxu1  ;;  %v2283_v44 = vpop.f32.mrf.mxu0 }
 0x2d7   :  { %v4684_v58 = vpop.f32.mrf.mxu1  ;;  %v4708_v19 = vpop.f32.mrf.mxu0 }
 0x2d9   :  { %v2202_v61 = vpop.f32.mrf.mxu1  ;;  %v2287_v25 = vpop.f32.mrf.mxu0 }
 0x2da   :  { %v2203_v4 = vadd.f32 %v2202_v61, %v2121_v27 }
 0x2db   :  { %v4687_v3 = vpop.f32.mrf.mxu1  ;;  %v4711_v28 = vpop.f32.mrf.mxu0 }
 0x2dc   :  { %v2316_v18 = vadd.f32 %v2287_v25, %v2203_v4  ;;  %v6172_v25 = vld [vmem:[%s6514_s4] ss:$0 sm:$0xff] }
 0x2dd   :  { %v2205_v35 = vpop.f32.mrf.mxu1  ;;  %v2290_v55 = vpop.f32.mrf.mxu0 }
 0x2df   :  { %v4688_v51 = vpop.f32.mrf.mxu1  ;;  %v4712_v47 = vpop.f32.mrf.mxu0 }
 0x2e1   :  { %v2209_v10 = vpop.f32.mrf.mxu1  ;;  %v2294_v12 = vpop.f32.mrf.mxu0 }
 0x2e2   :  { %v2210_v21 = vadd.f32 %v2209_v10, %v2128_v16  ;;  %v2196_v16 = vadd.f32 %v2195_v30, %v6136_v7 }
 0x2e3   :  { %v4691_v63 = vpop.f32.mrf.mxu1  ;;  %v4715_v31 = vpop.f32.mrf.mxu0 }
 0x2e4   :  { %v2317_v38 = vadd.f32 %v2294_v12, %v2210_v21  ;;  %v2315_v26 = vadd.f32 %v2280_v24, %v2196_v16 }
 0x2e5   :  { %v2212_v34 = vpop.f32.mrf.mxu1  ;;  %v2297_v32 = vpop.f32.mrf.mxu0 }
 0x2e6   :  { %v2213_v24 = vadd.f32 %v2212_v34, %v6147_v39 }
 0x2e7   :  { %v4692_v13 = vpop.f32.mrf.mxu1  ;;  %v4716_v37 = vpop.f32.mrf.mxu0 }
 0x2e9   :  { %v2217_v52 = vpop.f32.mrf.mxu1  ;;  %v2302_v50 = vpop.f32.mrf.mxu0 }
 0x2eb   :  { %v4695_v27 = vpop.f32.mrf.mxu1  ;;  %v4719_v6 = vpop.f32.mrf.mxu0 }
 0x2ed   :  { %v2219_v43 = vpop.f32.mrf.mxu1  ;;  %v2304_v49 = vpop.f32.mrf.mxu0 }
 0x2ee   :  { %v2220_v47 = vadd.f32 %v2219_v43, %v6155_v48 }
 0x2ef   :  { %v4696_v46 = vpop.f32.mrf.mxu1  ;;  %v4720_v54 = vpop.f32.mrf.mxu0 }
 0x2f0   :  { %v2319_v31 = vadd.f32 %v2304_v49, %v2220_v47 }
 0x2f1   :  { %v2224_v15 = vpop.f32.mrf.mxu1  ;;  %v2309_v33 = vpop.f32.mrf.mxu0 }
 0x2f3   :  { %v4699_v59 = vpop.f32.mrf.mxu1  ;;  %v4723_v20 = vpop.f32.mrf.mxu0 }
 0x2f5   :  { %v2226_v41 = vpop.f32.mrf.mxu1  ;;  %v2311_v60 = vpop.f32.mrf.mxu0 }
 0x2f6   :  { %v2227_v42 = vadd.f32 %v2226_v41, %v2145_v62 }
 0x2f7   :  { %v4700_v14 = vpop.f32.mrf.mxu1  ;;  %v4724_v23 = vpop.f32.mrf.mxu0 }
 0x2f8   :  { %v6164_v56 = vadd.f32 %v2311_v60, %v2227_v42  ;;  %v4921_v60 = vld [vmem:[%s6515_s5 + $0x58] sm:$0xff]  }
 0x2f9   :  { %v2371_v17 = vpop.f32.mrf.mxu1  ;;  %v4922_v42 = vld [vmem:[%s6515_s5 + $0x78] sm:$0xff]  }
 0x2fa   :  { %v2406_v11 = vadd.f32 %v2371_v17, %v2315_v26 }
 0x2fb   :  { %v4731_v0 = vpop.f32.mrf.mxu1 }
 0x2fc   :  { %v2418_v53 = vrot.slane %v2406_v11, 3 }
 0x2fd   :  { %v2374_v1 = vpop.f32.mrf.mxu1 }
 0x2fe   :  { %v2430_v40 = vadd.f32 %v2418_v53, %v6140_v8  ;;  %v2318_v8 = vadd.f32 %v2297_v32, %v2213_v24 }
 0x2ff   :  { %v4732_v9 = vpop.f32.mrf.mxu1 }
 0x300   :  { %v4923_v9 = vld [vmem:[%s6515_s5 + $0x50] sm:$0xff]  }
 0x301   :  { %v2378_v45 = vpop.f32.mrf.mxu1 }
 0x302   :  { %v2407_v44 = vadd.f32 %v2378_v45, %v2316_v18  ;;  %v2443_v18 = vadd.f32 %v6172_v25, %v2430_v40 }
 0x303   :  { %v4735_v58 = vpop.f32.mrf.mxu1 }
 0x304   :  { %v2419_v7 = vrot.slane %v2407_v44, 3  ;;  %v2449_v10 = vpack.c.bf16 %v2443_v18, %v2443_v18 }
 0x305   :  { %v2381_v30 = vpop.f32.mrf.mxu1 }
 0x306   :  { %v2431_v62 = vadd.f32 %v2419_v7, %v6144_v29  ;;  %v2469_v34 = vunpack.c.l.b16 %v2449_v10 }
 0x307   :  { %v4736_v19 = vpop.f32.mrf.mxu1 }
 0x308   :  { %v2444_v32 = vadd.f32 %v6172_v25, %v2431_v62  ;;  %v2471_v6 = vrot.slane %v2469_v34, 2  ;;  %v2621_v48 = vrot.slane %v2469_v34, 4 }
 0x309   :  { %v2385_v61 = vpop.f32.mrf.mxu1 }
 0x30a   :  { %v2408_v4 = vadd.f32 %v2385_v61, %v2317_v38  ;;  %v2693_v43 = vpack.c.bf16 %v2444_v32, %v2444_v32 }
 0x30b   :  { %v4739_v3 = vpop.f32.mrf.mxu1 }
 0x30c   :  { %v2420_v28 = vrot.slane %v2408_v4, 3  ;;  %v2705_v14 = vunpack.c.l.b16 %v2693_v43  ;;  %v4938_v43 = vld [vmem:[%s6515_s5 + $0xf8] sm:$0xff]  }
 0x30d   :  { %v2388_v35 = vpop.f32.mrf.mxu1 }
 0x30e   :  { %v2432_v55 = vadd.f32 %v2420_v28, %v6150_v36  ;;  %v2409_v51 = vadd.f32 %v2388_v35, %v2318_v8  ;;  %v2786_v45 = vrot.slane %v2705_v14, 2  ;;  %v2866_v44 = vrot.slane %v2705_v14, 4  ;;  %v4926_v28 = vld [vmem:[%s6515_s5 + $0x68] sm:$0xff]  }
 0x30f   :  { %v4740_v29 = vpop.f32.mrf.mxu1 }
 0x310   :  { %v2421_v39 = vrot.slane %v2409_v51, 3  ;;  %v4928_v51 = vld [vmem:[%s6515_s5 + $0x60] sm:$0xff]  }
 0x311   :  { %v2393_v12 = vpop.f32.mrf.mxu1 }
 0x312   :  { %v2433_v21 = vadd.f32 %v2421_v39, %v6153_v22 }
 0x313   :  { %v4743_v63 = vpop.f32.mrf.mxu1 }
 0x314   :  { %v2446_v38 = vadd.f32 %v6172_v25, %v2433_v21 }
 0x315   :  { %v2395_v13 = vpop.f32.mrf.mxu1 }
 0x316   :  { %v2450_v37 = vpack.c.bf16 %v2446_v38, %v2446_v38  ;;  %v2410_v52 = vadd.f32 %v2395_v13, %v2319_v31  ;;  %v4929_v31 = vld [vmem:[%s6515_s5 + $0x98] sm:$0xff]   ;;  %v4931_v13 = vld [vmem:[%s6515_s5 + $0x90] sm:$0xff]  }
 0x317   :  { %v4744_v36 = vpop.f32.mrf.mxu1 }
 0x318   :  { %v2470_v50 = vunpack.c.l.b16 %v2450_v37  ;;  %v2422_v27 = vrot.slane %v2410_v52, 3  ;;  %v4932_v37 = vld [vmem:[%s6515_s5 + $0xb0] sm:$0xff]   ;;  %v4933_v52 = vld [vmem:[%s6515_s5 + $0x88] sm:$0xff]  }
 0x319   :  { %v2400_v46 = vpop.f32.mrf.mxu1  ;;  %v4934_v36 = vld [vmem:[%s6515_s5 + $0xa8] sm:$0xff]  }
 0x31a   :  { %v2472_v54 = vrot.slane %v2470_v50, 1  ;;  %v2543_v22 = vrot.slane %v2470_v50, 7  ;;  %v2622_v15 = vrot.slane %v2470_v50, 3  ;;  %v2434_v49 = vadd.f32 %v2422_v27, %v6158_v5  ;;  %v4935_v50 = vld [vmem:[%s6515_s5 + $0x80] sm:$0xff]  }
 0x31b   :  { %v4747_v33 = vpop.f32.mrf.mxu1  ;;  %v2445_v5 = vadd.f32 %v6172_v25, %v2432_v55  ;;  %v4936_v27 = vld [vmem:[%s6515_s5 + $0xa0] sm:$0xff]  }
 0x31c   :  { %v2474_v59 = vsel %vm2473_vm4, %v2472_v54, %v2471_v6  ;;  %v2544_v20 = vsel %vm2473_vm4, %v2543_v22, %v2469_v34  ;;  %v6184_v16 = vsel %vm2473_vm4, %v2622_v15, %v2621_v48  ;;  %v2447_v41 = vadd.f32 %v6172_v25, %v2434_v49  ;;  %v4930_v34 = vld [vmem:[%s6515_s5 + $0xb8] sm:$0xff]   ;;  %v4939_v54 = vld [vmem:[%s6515_s5 + $0xd0] sm:$0xff]   ;;  %v4941_v15 = vld [vmem:[%s6515_s5 + $0xc8] sm:$0xff]  }
 0x31d   :  { %v2475_v23 = vpack.c.b16 %v2474_v59, %v2474_v59  ;;  %v2545_v26 = vpack.c.b16 %v2544_v20, %v2544_v20  ;;  %v2402_v17 = vpop.f32.mrf.mxu1  ;;  %v2938_v58 = vpack.c.bf16 %v2445_v5, %v2445_v5  ;;  %v2624_v38 = vpack.c.b16 %v6184_v16, %v6184_v16  ;;  %v4937_v6 = vld [vmem:[%s6515_s5 + $0xd8] sm:$0xff]   ;;  %v4940_v22 = vld [vmem:[%s6515_s5 + $0xf0] sm:$0xff]   ;;  %v4942_v49 = vld [vmem:[%s6515_s5 + $0xe8] sm:$0xff]  }
 0x31e   :  { %v2694_v11 = vpack.c.bf16 %v2447_v41, %v2447_v41  ;;  %v2411_v0 = vadd.f32 %v2402_v17, %v6164_v56  ;;  %v4924_v56 = vld [vmem:[%s6515_s5 + $0x70] sm:$0xff]   ;;  %v4943_v33 = vld [vmem:[%s6515_s5 + $0xc0] sm:$0xff]   ;;  %v4945_v20 = vld [vmem:[%s6515_s5 + $0x118] sm:$0xff]  }
 0x31f   :  { %v4748_v53 = vpop.f32.mrf.mxu1  ;;  %4758 = vmatmul.mubr.msk.bf16.vlgmr.msra.gmra.mxu0 %vm229_vm1, %v2475_v23  ;;  %4770 = vmatmul.mubr.msk.bf16.vlgmr.msra.gmra.mxu1 %vm229_vm1, %v2545_v26  ;;  %v2950_v8 = vunpack.c.l.b16 %v2938_v58  ;;  %v4944_v59 = vld [vmem:[%s6515_s5 + $0xe0] sm:$0xff]   ;;  %v4954_v26 = vld [vmem:[%s6517_s7 + $0x6c] ss:$16 sps:$4 sm:$0xff]  }
 0x320   :  { %v2706_v1 = vunpack.c.l.b16 %v2694_v11  ;;  %v2423_v40 = vrot.slane %v2411_v0, 3  ;;  %4774 = vmatpush3.bf16.msra.mxu0 %v4921_v60  ;;  %4786 = vmatpush3.bf16.msra.mxu1 %v4922_v42  ;;  %v4946_v60 = vld [vmem:[%s6515_s5 + $0x110] sm:$0xff]   ;;  %v4947_v42 = vld [vmem:[%s6515_s5 + $0x108] sm:$0xff]  }
 0x321   :  { %4775 = vmatprep.subr.bf16.mxu0 %v5027_v2  ;;  %4787 = vmatprep.subr.bf16.mxu1 %v5027_v2  ;;  %v3031_v55 = vrot.slane %v2950_v8, 2  ;;  %v3111_v29 = vrot.slane %v2950_v8, 4  ;;  %v4951_v23 = vld [vmem:[%s6517_s7 + $0x64] ss:$16 sps:$4 sm:$0xff]   ;;  %v4949_v17 = vld [vmem:[%s6517_s7 + $0x60] ss:$16 sps:$4 sm:$0xff]  }
 0x322   :  { %v2707_v7 = vrot.slane %v2706_v1, 7  ;;  %v2787_v30 = vrot.slane %v2706_v1, 1  ;;  %v2867_v62 = vrot.slane %v2706_v1, 3  ;;  %v2435_v19 = vadd.f32 %v2423_v40, %v6161_v57  ;;  %4781 = vmatprep.mubr.msk.bf16.mxu0 %vm5028_vm2, %v5027_v2  ;;  %4793 = vmatprep.mubr.msk.bf16.mxu1 %vm5028_vm2, %v5027_v2  ;;  %v4925_v57 = vld [vmem:[%s6515_s5 + $0x48] sm:$0xff]   ;;  %v4957_v11 = vld [vmem:[%s6517_s7 + $0x44] ss:$16 sps:$4 sm:$0xff]  }
 0x323   :  { %v4960_v0 = vld [vmem:[%s6517_s7 + $0x4c] ss:$16 sps:$4 sm:$0xff]   ;;  %v4955_v53 = vld [vmem:[%s6517_s7 + $0x40] ss:$16 sps:$4 sm:$0xff]   ;;  %v4958_v1 = vld [vmem:[%s6517_s7 + $0x48] ss:$16 sps:$4 sm:$0xff]  }
 0x324   :  { %v2708_v24 = vsel %vm2473_vm4, %v2707_v7, %v2705_v14  ;;  %v6212_v61 = vsel %vm2473_vm4, %v2787_v30, %v2786_v45  ;;  %v6215_v4 = vsel %vm2473_vm4, %v2867_v62, %v2866_v44  ;;  %v2448_v3 = vadd.f32 %v6172_v25, %v2435_v19  ;;  %4776 = vmatpush3.bf16.msra.mxu0 %v4923_v9  ;;  %v4927_v25 = vld [vmem:[%s6515_s5 + $0x40] sm:$0xff]   ;;  %v4966_v9 = vld [vmem:[%s6517_s7 + $0x2c] ss:$16 sps:$4 sm:$0xff]   ;;  %v4964_v44 = vld [vmem:[%s6517_s7 + $0x28] ss:$16 sps:$4 sm:$0xff]  }
 0x325   :  { %4788 = vmatpush3.bf16.msra.mxu1 %v4924_v56  ;;  %4777 = vmatprep.subr.bf16.mxu0 %v5027_v2  ;;  %v2709_v32 = vpack.c.b16 %v2708_v24, %v2708_v24  ;;  %v2789_v48 = vpack.c.b16 %v6212_v61, %v6212_v61  ;;  %v2869_v46 = vpack.c.b16 %v6215_v4, %v6215_v4  ;;  %v4948_v14 = vld [vmem:[%s6515_s5 + $0x100] sm:$0xff]   ;;  %v4972_v56 = vld [vmem:[%s6517_s7 + $0xc] ss:$16 sps:$4 sm:$0xff]   ;;  %v4970_v30 = vld [vmem:[%s6517_s7 + $0x8] ss:$16 sps:$4 sm:$0xff]   ;;  %v5029_v62 = vmov 0  }
 0x326   :  { %v2939_v18 = vpack.c.bf16 %v2448_v3, %v2448_v3  ;;  %4789 = vmatprep.subr.bf16.mxu1 %v5027_v2  ;;  %v4963_v40 = vld [vmem:[%s6517_s7 + $0x24] ss:$16 sps:$4 sm:$0xff]   ;;  %v4961_v45 = vld [vmem:[%s6517_s7 + $0x20] ss:$16 sps:$4 sm:$0xff]   ;;  %v4973_v19 = vld [vmem:[%s6519_s9 + $0x78] sm:$0xff]  }
 0x327   :  { %v4969_v58 = vld [vmem:[%s6517_s7 + $0x4] ss:$16 sps:$4 sm:$0xff]   ;;  %v4967_v7 = vld [vmem:[%s6517_s7] ss:$16 sps:$4 sm:$0xff]   ;;  %v4974_v24 = vld [vmem:[%s6519_s9 + $0xf8] sm:$0xff]  }
 0x328   :  { %v2951_v35 = vunpack.c.l.b16 %v2939_v18  ;;  %4778 = vmatpush3.bf16.msra.mxu0 %v4925_v57 }
 0x329   :  { %4790 = vmatpush3.bf16.msra.mxu1 %v4926_v28  ;;  %4779 = vmatprep.subr.bf16.mxu0 %v5027_v2 }
 0x32a   :  { %v2952_v47 = vrot.slane %v2951_v35, 7  ;;  %v3032_v39 = vrot.slane %v2951_v35, 1  ;;  %v3112_v10 = vrot.slane %v2951_v35, 3  ;;  %4791 = vmatprep.subr.bf16.mxu1 %v5027_v2 }
 0x32c   :  { %v6235_v12 = vsel %vm2473_vm4, %v2952_v47, %v2950_v8  ;;  %v6238_v21 = vsel %vm2473_vm4, %v3032_v39, %v3031_v55  ;;  %v6241_v63 = vsel %vm2473_vm4, %v3112_v10, %v3111_v29  ;;  %4780 = vmatpush3.bf16.msra.mxu0 %v4927_v25 }
 0x32d   :  { %4792 = vmatpush3.bf16.msra.mxu1 %v4928_v51  ;;  %4797 = vmatprep.subr.bf16.mxu0 %v5027_v2  ;;  %v2954_v16 = vpack.c.b16 %v6235_v12, %v6235_v12  ;;  %v3034_v41 = vpack.c.b16 %v6238_v21, %v6238_v21  ;;  %v3114_v5 = vpack.c.b16 %v6241_v63, %v6241_v63 }
 0x32e   :  { %4809 = vmatprep.subr.bf16.mxu1 %v5027_v2 }
 0x32f   :  { %4782 = vmatmul.mubr.msk.bf16.vlgmr.msra.gmra.mxu0 %vm229_vm1, %v2624_v38 }
 0x330   :  { %4794 = vmatmul.mubr.msk.bf16.vlgmr.msra.gmra.mxu1 %vm229_vm1, %v2709_v32  ;;  %4798 = vmatpush3.bf16.msra.mxu0 %v4929_v31 }
 0x331   :  { %4810 = vmatpush3.bf16.msra.mxu1 %v4930_v34  ;;  %4799 = vmatprep.subr.bf16.mxu0 %v5027_v2 }
 0x332   :  { %4811 = vmatprep.subr.bf16.mxu1 %v5027_v2  ;;  %4805 = vmatprep.mubr.msk.bf16.mxu0 %vm5028_vm2, %v5027_v2 }
 0x333   :  { %4817 = vmatprep.mubr.msk.bf16.mxu1 %vm5028_vm2, %v5027_v2 }
 0x334   :  { %4800 = vmatpush3.bf16.msra.mxu0 %v4931_v13 }
 0x335   :  { %4812 = vmatpush3.bf16.msra.mxu1 %v4932_v37  ;;  %4801 = vmatprep.subr.bf16.mxu0 %v5027_v2 }
 0x336   :  { %4813 = vmatprep.subr.bf16.mxu1 %v5027_v2 }
 0x338   :  { %4802 = vmatpush3.bf16.msra.mxu0 %v4933_v52 }
 0x339   :  { %4814 = vmatpush3.bf16.msra.mxu1 %v4934_v36  ;;  %4803 = vmatprep.subr.bf16.mxu0 %v5027_v2 }
 0x33a   :  { %4815 = vmatprep.subr.bf16.mxu1 %v5027_v2 }
 0x33c   :  { %4804 = vmatpush3.bf16.msra.mxu0 %v4935_v50 }
 0x33d   :  { %4816 = vmatpush3.bf16.msra.mxu1 %v4936_v27  ;;  %4821 = vmatprep.subr.bf16.mxu0 %v5027_v2 }
 0x33e   :  { %4833 = vmatprep.subr.bf16.mxu1 %v5027_v2 }
 0x33f   :  { %4806 = vmatmul.mubr.msk.bf16.vlgmr.msra.gmra.mxu0 %vm229_vm1, %v2789_v48 }
 0x340   :  { %4818 = vmatmul.mubr.msk.bf16.vlgmr.msra.gmra.mxu1 %vm229_vm1, %v2869_v46  ;;  %4822 = vmatpush3.bf16.msra.mxu0 %v4937_v6 }
 0x341   :  { %4834 = vmatpush3.bf16.msra.mxu1 %v4938_v43  ;;  %4823 = vmatprep.subr.bf16.mxu0 %v5027_v2 }
 0x342   :  { %4835 = vmatprep.subr.bf16.mxu1 %v5027_v2  ;;  %4829 = vmatprep.mubr.msk.bf16.mxu0 %vm5028_vm2, %v5027_v2 }
 0x343   :  { %4841 = vmatprep.mubr.msk.bf16.mxu1 %vm5028_vm2, %v5027_v2 }
 0x344   :  { %4824 = vmatpush3.bf16.msra.mxu0 %v4939_v54 }
 0x345   :  { %4836 = vmatpush3.bf16.msra.mxu1 %v4940_v22  ;;  %4825 = vmatprep.subr.bf16.mxu0 %v5027_v2 }
 0x346   :  { %4837 = vmatprep.subr.bf16.mxu1 %v5027_v2 }
 0x348   :  { %4826 = vmatpush3.bf16.msra.mxu0 %v4941_v15 }
 0x349   :  { %4838 = vmatpush3.bf16.msra.mxu1 %v4942_v49  ;;  %4827 = vmatprep.subr.bf16.mxu0 %v5027_v2 }
 0x34a   :  { %4839 = vmatprep.subr.bf16.mxu1 %v5027_v2 }
 0x34c   :  { %4828 = vmatpush3.bf16.msra.mxu0 %v4943_v33 }
 0x34d   :  { %4840 = vmatpush3.bf16.msra.mxu1 %v4944_v59  ;;  %4845 = vmatprep.subr.bf16.mxu0 %v5027_v2 }
 0x34e   :  { %3321 = vmatprep.subr.bf16.mxu1 %v4951_v23  ;;  %v4975_v23 = vld [vmem:[%s6519_s9 + $0x38] sm:$0xff]  }
 0x34f   :  { %4830 = vmatmul.mubr.msk.bf16.vlgmr.msra.gmra.mxu0 %vm229_vm1, %v2954_v16 }
 0x350   :  { %4842 = vmatmul.mubr.msk.bf16.vlgmr.msra.gmra.mxu1 %vm229_vm1, %v3034_v41  ;;  %4846 = vmatpush3.bf16.msra.mxu0 %v4945_v20  ;;  %v3968_v41 = vld [vmem:[%s6516_s6] ss:$0 sm:$0xff]  ;;  %s5030_s6 = smov [#allocation2]  }
 0x351   :  { %4847 = vmatprep.subr.bf16.mxu0 %v5027_v2  ;;  %4853 = vmatprep.mubr.msk.bf16.mxu0 %vm5028_vm2, %v5027_v2  ;;  %s3753_s23 = sshll.u32 %s5030_s6, 4  ;;  %s3754_s23 = int_to_ptr.vmem [resolvable:$true] %s3753_s23 }
 0x352   :  { %3322 = vmatpush1.bf16.msra.mxu1 %v4949_v17  ;;  %3345 = vmatprep.mubr.bf16.mxu1 %v5029_v62  ;;  %s5005_s1 = scalar_lea.vmem %s3754_s23, 32  ;;  %p5010_p1 = scmp.lt.s32.totalorder %s3754_s23, %s3754_s23 }
 0x353   :  { %3323 = vmatprep.subr.bf16.mxu1 %v4957_v11  ;;  %v4978_v11 = vld [vmem:[%s6519_s9 + $0xf0] sm:$0xff]   ;;  %p5006_p0 = scmp.ne.s32.totalorder %s3754_s23, %s5005_s1  ;;  %p5011_p2 = scmp.lt.s32.totalorder %s5005_s1, %s5005_s1 }
 0x354   :  { %4848 = vmatpush3.bf16.msra.mxu0 %v4946_v60 }
 0x355   :  { %4849 = vmatprep.subr.bf16.mxu0 %v5027_v2  ;;  %p5012_p3 = por %p5011_p2, %p5010_p1 }
 0x356   :  { %3324 = vmatpush1.bf16.msra.mxu1 %v4955_v53  ;;  %v4979_v53 = vld [vmem:[%s6519_s9 + $0x30] sm:$0xff]  }
 0x357   :  { %3325 = vmatprep.subr.bf16.mxu1 %v4963_v40  ;;  %v4981_v40 = vld [vmem:[%s6519_s9 + $0x68] sm:$0xff]   ;;  %p5013_p4 = pnand %p5012_p3, %p5006_p0 }
 0x358   :  { %4850 = vmatpush3.bf16.msra.mxu0 %v4947_v42 }
 0x359   :  { %4851 = vmatprep.subr.bf16.mxu0 %v5027_v2  ;;  %v4952_v2 = vld [vmem:[%s6517_s7 + $0x68] ss:$16 sps:$4 sm:$0xff]  }
 0x35a   :  { %3326 = vmatpush1.bf16.msra.mxu1 %v4961_v45  ;;  %v4983_v45 = vld [vmem:[%s6519_s9 + $0x28] sm:$0xff]  }
 0x35b   :  { %3327 = vmatprep.subr.bf16.mxu1 %v4969_v58  ;;  %v4985_v58 = vld [vmem:[%s6519_s9 + $0x60] sm:$0xff]  }
 0x35c   :  { %4852 = vmatpush3.bf16.msra.mxu0 %v4948_v14 }
 0x35d   :  { %3362 = vmatprep.subr.bf16.mxu0 %v4954_v26  ;;  %v4976_v26 = vld [vmem:[%s6519_s9 + $0xb8] sm:$0xff]  }
 0x35e   :  { %3328 = vmatpush1.bf16.msra.mxu1 %v4967_v7  ;;  %v4987_v7 = vld [vmem:[%s6519_s9 + $0x20] sm:$0xff]  }
 0x35f   :  { %4854 = vmatmul.mubr.msk.bf16.vlgmr.msra.gmra.mxu0 %vm229_vm1, %v3114_v5  ;;  %4225 = vmatprep.subr.bf16.mxu1 %v4973_v19  ;;  %v4990_v19 = vld [vmem:[%s6519_s9 + $0xd8] sm:$0xff]  }
 0x360   :  { %3363 = vmatpush1.bf16.msra.mxu0 %v4952_v2  ;;  %3386 = vmatprep.mubr.bf16.mxu0 %v5029_v62  ;;  %v4977_v2 = vld [vmem:[%s6519_s9 + $0x70] sm:$0xff]   ;;  %v4989_v62 = vld [vmem:[%s6519_s9 + $0x58] sm:$0xff]  }
 0x361   :  { %3364 = vmatprep.subr.bf16.mxu0 %v4960_v0 }
 0x364   :  { %3365 = vmatpush1.bf16.msra.mxu0 %v4958_v1  ;;  %v4980_v1 = vld [vmem:[%s6519_s9 + $0xb0] sm:$0xff]  }
 0x365   :  { %3366 = vmatprep.subr.bf16.mxu0 %v4966_v9  ;;  %v4982_v9 = vld [vmem:[%s6519_s9 + $0xe8] sm:$0xff]  }
 0x368   :  { %3367 = vmatpush1.bf16.msra.mxu0 %v4964_v44  ;;  %v4984_v44 = vld [vmem:[%s6519_s9 + $0xa8] sm:$0xff]  }
 0x369   :  { %3368 = vmatprep.subr.bf16.mxu0 %v4972_v56  ;;  %v4986_v56 = vld [vmem:[%s6519_s9 + $0xe0] sm:$0xff]  }
 0x36c   :  { %3369 = vmatpush1.bf16.msra.mxu0 %v4970_v30  ;;  %v4988_v30 = vld [vmem:[%s6519_s9 + $0xa0] sm:$0xff]  }
 0x36d   :  { %4247 = vmatprep.subr.bf16.mxu0 %v4974_v24  ;;  %v4991_v24 = vld [vmem:[%s6519_s9 + $0x18] sm:$0xff]  }
 0x3df   :  { %v2537_v61 = vpop.f32.mrf.mxu0  ;;  %v2607_v4 = vpop.f32.mrf.mxu1 }
 0x3e0   :  { %v2608_v52 = vadd.f32 %v2607_v4, %v2537_v61  ;;  %v4992_v61 = vld [vmem:[%s6519_s9 + $0x98] sm:$0xff]   ;;  %v4993_v4 = vld [vmem:[%s6519_s9 + $0x50] sm:$0xff]  }
 0x3e1   :  { %v4759_v3 = vpop.f32.mrf.mxu0  ;;  %v4771_v57 = vpop.f32.mrf.mxu1 }
 0x3e2   :  { %v4994_v3 = vld [vmem:[%s6519_s9 + $0xd0] sm:$0xff]  }
 0x3e3   :  { %v2540_v8 = vpop.f32.mrf.mxu0  ;;  %v2610_v28 = vpop.f32.mrf.mxu1  ;;  %v4995_v57 = vld [vmem:[%s6519_s9 + $0x10] sm:$0xff]  }
 0x3e4   :  { %v4996_v8 = vld [vmem:[%s6519_s9 + $0x90] sm:$0xff]   ;;  %v4997_v28 = vld [vmem:[%s6519_s9 + $0x48] sm:$0xff]  }
 0x3e5   :  { %v4760_v18 = vpop.f32.mrf.mxu0  ;;  %v4772_v35 = vpop.f32.mrf.mxu1 }
 0x3e6   :  { %v4998_v18 = vld [vmem:[%s6519_s9 + $0xc8] sm:$0xff]  }
 0x3e7   :  { %v4999_v35 = vld [vmem:[%s6519_s9 + $0x8] sm:$0xff]  }
 0x3ef   :  { %v2686_v25 = vpop.f32.mrf.mxu0 }
 0x3f0   :  { %v2771_v55 = vpop.f32.mrf.mxu1  ;;  %v2692_v36 = vadd.f32 %v2686_v25, %v2608_v52  ;;  %v5000_v25 = vld [vmem:[%s6519_s9 + $0x88] sm:$0xff]  }
 0x3f1   :  { %v4783_v51 = vpop.f32.mrf.mxu0 }
 0x3f2   :  { %v4795_v29 = vpop.f32.mrf.mxu1  ;;  %v2777_v48 = vadd.f32 %v2771_v55, %v2692_v36  ;;  %v5001_v55 = vld [vmem:[%s6519_s9 + $0x40] sm:$0xff]  }
 0x3f3   :  { %v2689_v47 = vpop.f32.mrf.mxu0  ;;  %v5002_v51 = vld [vmem:[%s6519_s9 + $0xc0] sm:$0xff]  }
 0x3f4   :  { %v2774_v39 = vpop.f32.mrf.mxu1  ;;  %v5003_v29 = vld [vmem:[%s6519_s9] sm:$0xff]  }
 0x3f5   :  { %v4784_v10 = vpop.f32.mrf.mxu0  ;;  %v5004_v47 = vld [vmem:[%s6519_s9 + $0x80] sm:$0xff]   ;;  %v3210_v39 = vlaneseq }
 0x3f6   :  { %v4796_v12 = vpop.f32.mrf.mxu1 }
 0x3f7   :  { %v3211_v10 = vshrl.u32 %v3210_v39, 7 }
 0x3f9   :  { %v3212_v12 = vsub.s32 0, %v3211_v10 }
 0x3ff   :  { %v2851_v21 = vpop.f32.mrf.mxu0 }
 0x400   :  { %v2931_v63 = vpop.f32.mrf.mxu1  ;;  %v2857_v54 = vadd.f32 %v2851_v21, %v2777_v48  ;;  %v3220_v21 = vsub.s32 2, %v3211_v10 }
 0x401   :  { %v4807_v31 = vpop.f32.mrf.mxu0 }
 0x402   :  { %v4819_v38 = vpop.f32.mrf.mxu1  ;;  %v2937_v33 = vadd.f32 %v2931_v63, %v2857_v54  ;;  %v3208_v63 = vld [vmem:[%s6518_s8] sm:$0xf]  ;;  %v3216_v31 = vsub.s32 1, %v3211_v10 }
 0x403   :  { %v2854_v34 = vpop.f32.mrf.mxu0  ;;  %v3224_v38 = vsub.s32 3, %v3211_v10 }
 0x404   :  { %v2934_v32 = vpop.f32.mrf.mxu1  ;;  %v3213_v34 = vrot.slane %v3208_v63, %v3212_v12 }
 0x405   :  { %v4808_v13 = vpop.f32.mrf.mxu0  ;;  %v3221_v32 = vrot.slane %v3208_v63, %v3220_v21 }
 0x406   :  { %v4820_v37 = vpop.f32.mrf.mxu1  ;;  %v3217_v13 = vrot.slane %v3208_v63, %v3216_v31 }
 0x407   :  { %v3225_v37 = vrot.slane %v3208_v63, %v3224_v38 }
 0x40f   :  { %v3016_v50 = vpop.f32.mrf.mxu0 }
 0x410   :  { %v3096_v27 = vpop.f32.mrf.mxu1  ;;  %v3022_v59 = vadd.f32 %v3016_v50, %v2937_v33 }
 0x411   :  { %v4831_v6 = vpop.f32.mrf.mxu0 }
 0x412   :  { %v4843_v43 = vpop.f32.mrf.mxu1  ;;  %v3102_v20 = vadd.f32 %v3096_v27, %v3022_v59 }
 0x413   :  { %v3019_v46 = vpop.f32.mrf.mxu0 }
 0x414   :  { %v3099_v22 = vpop.f32.mrf.mxu1 }
 0x415   :  { %v4832_v15 = vpop.f32.mrf.mxu0 }
 0x416   :  { %v4844_v49 = vpop.f32.mrf.mxu1 }
 0x41f   :  { %v3176_v16 = vpop.f32.mrf.mxu0 }
 0x420   :  { %v3182_v60 = vadd.f32 %v3176_v16, %v3102_v20 }
 0x421   :  { %v4855_v42 = vpop.f32.mrf.mxu0 }
 0x422   :  { %v3190_v14 = vadd.f32 %v3968_v41, %v3182_v60 }
 0x423   :  { %v3179_v5 = vpop.f32.mrf.mxu0 }
 0x424   :  { %v3191_v17 = vpack.c.bf16 %v3190_v14, %v3190_v14 }
 0x425   :  { %v4856_v0 = vpop.f32.mrf.mxu0 }
 0x426   :  { %3985 = vmatmul.mubr.msk.bf16.vlgmr.msra.gmra.mxu1 %vm229_vm1, %v3191_v17  ;;  %3986 = vmatmul.mubr.msk.bf16.vlgmr.msra.gmra.mxu0 %vm229_vm1, %v3191_v17 }
 0x427   :  { %4226 = vmatpush3.bf16.msra.mxu1 %v4975_v23  ;;  %4248 = vmatpush3.bf16.msra.mxu0 %v4976_v26  ;;  %v3987_v26 = vld [vmem:[%s6520_s10] ss:$0 sm:$0xff] }
 0x428   :  { %4227 = vmatprep.subr.bf16.mxu1 %v4977_v2  ;;  %4249 = vmatprep.subr.bf16.mxu0 %v4978_v11 }
 0x42b   :  { %4228 = vmatpush3.bf16.msra.mxu1 %v4979_v53  ;;  %4250 = vmatpush3.bf16.msra.mxu0 %v4980_v1 }
 0x42c   :  { %4229 = vmatprep.subr.bf16.mxu1 %v4981_v40  ;;  %4251 = vmatprep.subr.bf16.mxu0 %v4982_v9 }
 0x42f   :  { %4230 = vmatpush3.bf16.msra.mxu1 %v4983_v45  ;;  %4252 = vmatpush3.bf16.msra.mxu0 %v4984_v44 }
 0x430   :  { %4231 = vmatprep.subr.bf16.mxu1 %v4985_v58  ;;  %4253 = vmatprep.subr.bf16.mxu0 %v4986_v56 }
 0x433   :  { %4232 = vmatpush3.bf16.msra.mxu1 %v4987_v7  ;;  %4254 = vmatpush3.bf16.msra.mxu0 %v4988_v30 }
 0x434   :  { %4233 = vmatprep.subr.bf16.mxu1 %v4989_v62  ;;  %4255 = vmatprep.subr.bf16.mxu0 %v4990_v19 }
 0x437   :  { %4234 = vmatpush3.bf16.msra.mxu1 %v4991_v24  ;;  %4256 = vmatpush3.bf16.msra.mxu0 %v4992_v61 }
 0x438   :  { %4235 = vmatprep.subr.bf16.mxu1 %v4993_v4  ;;  %4257 = vmatprep.subr.bf16.mxu0 %v4994_v3 }
 0x43b   :  { %4236 = vmatpush3.bf16.msra.mxu1 %v4995_v57  ;;  %4258 = vmatpush3.bf16.msra.mxu0 %v4996_v8 }
 0x43c   :  { %4237 = vmatprep.subr.bf16.mxu1 %v4997_v28  ;;  %4259 = vmatprep.subr.bf16.mxu0 %v4998_v18 }
 0x43f   :  { %4238 = vmatpush3.bf16.msra.mxu1 %v4999_v35  ;;  %4260 = vmatpush3.bf16.msra.mxu0 %v5000_v25 }
 0x440   :  { %4239 = vmatprep.subr.bf16.mxu1 %v5001_v55  ;;  %4261 = vmatprep.subr.bf16.mxu0 %v5002_v51 }
 0x443   :  { %4240 = vmatpush3.bf16.msra.mxu1 %v5003_v29  ;;  %4262 = vmatpush3.bf16.msra.mxu0 %v5004_v47 }
 0x4e6   :  { %v3347_v52 = vpop.f32.mrf.mxu1  ;;  %v3388_v36 = vpop.f32.mrf.mxu0 }
 0x4e7   :  { %v3348_v50 = vadd.f32 %v3347_v52, %v3213_v34  ;;  %v3389_v27 = vadd.f32 %v3388_v36, %v3221_v32 }
 0x4e8   :  { %v3349_v6 = vpop.f32.mrf.mxu1  ;;  %v3390_v48 = vpop.f32.mrf.mxu0 }
 0x4e9   :  { %v3350_v43 = vadd.f32 %v3349_v6, %v3217_v13  ;;  %v3391_v46 = vadd.f32 %v3390_v48, %v3225_v37  ;;  %v3395_v54 = vmax.f32 %v3348_v50, 0.0  ;;  %v3397_v22 = vmax.f32 %v3389_v27, 0.0 }
 0x4ea   :  { %v3351_v15 = vpop.f32.mrf.mxu1  ;;  %v3392_v49 = vpop.f32.mrf.mxu0 }
 0x4eb   :  { %v3396_v33 = vmax.f32 %v3350_v43, 0.0  ;;  %v3398_v59 = vmax.f32 %v3391_v46, 0.0  ;;  %v3399_v42 = vpack.c.bf16 %v3395_v54, %v3395_v54  ;;  %v3401_v14 = vpack.c.bf16 %v3397_v22, %v3397_v22 }
 0x4ec   :  { %v3352_v20 = vpop.f32.mrf.mxu1  ;;  %v3393_v16 = vpop.f32.mrf.mxu0 }
 0x4ed   :  { %v3400_v41 = vpack.c.bf16 %v3396_v33, %v3396_v33  ;;  %v3402_v60 = vpack.c.bf16 %v3398_v59, %v3398_v59 }
 0x4ef   :  { %3698 = vmatprep.mubr.bf16.mxu1 %v3400_v41  ;;  %3738 = vmatprep.mubr.bf16.mxu0 %v3402_v60 }
 0x4f0   :  { %3699 = vmatmul.mubr.bf16.vlgmr.msra.gmra.mxu1 %v3399_v42  ;;  %3739 = vmatmul.mubr.bf16.vlgmr.msra.gmra.mxu0 %v3401_v14 }
 0x5b0   :  { %v4241_v5 = vpop.f32.mrf.mxu1  ;;  %v4263_v23 = vpop.f32.mrf.mxu0 }
 0x5b2   :  { %v4242_v17 = vpop.f32.mrf.mxu1  ;;  %v4264_v2 = vpop.f32.mrf.mxu0 }
 0x5b3   :  { %v4243_v11 = vadd.f32 %v4242_v17, %v4241_v5  ;;  %v4265_v40 = vadd.f32 %v4264_v2, %v4263_v23 }
 0x5b4   :  { %v4244_v0 = vpop.f32.mrf.mxu1  ;;  %v4266_v53 = vpop.f32.mrf.mxu0 }
 0x5b5   :  { %v3701_v1 = vadd.f32 %v4243_v11, %v3987_v26 }
 0x5b6   :  { %v4245_v9 = vpop.f32.mrf.mxu1  ;;  %v4267_v45 = vpop.f32.mrf.mxu0 }
 0x5b7   :  { %v3741_v44 = vadd.f32 %v4265_v40, %v3701_v1 }
 0x5b9   :  { %3746 = vst [vmem:[#allocation2] sm:$0x3] %v3741_v44 }
 0x5ba   :  { %5016 = shalt.err (!%p5013_p4)
}
 0x5bb   :  { %3756 = dma.vmem_to_hbm [thread:$0]  %s3754_s23, 32, %s6521_s11, [#allocation3]  }
 0x5bc   :  { %5025 = dma.done.wait [#allocation3], 32  }
 0x5bd   :  { %5026 = vsyncadd [#allocation3], 4294967264 }
 0x5be   :  { %3760 = vsyncpa [#allocation3], 1 }

</bundles_post_ra>
